<compile_context>
chip_gen: v7x
topology: tpu7x:2x2x1
jax: 0.10.0
libtpu: 0.0.40
codegen_flags: <defaults>
</compile_context>

<pallas_src>
from functools import partial

import jax
import jax.numpy as jnp
from jax.experimental import pallas as pl
from jax.experimental.pallas import tpu as pltpu

NEG_SLOPE = 0.01  # F.leaky_relu default negative_slope


def _conv3d_lrelu_kernel(x_ref, b_ref, o_ref, *, H, WpC, WCo, TT, dil):
    # x_ref: (1, Tp, Hp, Wp*Cin)   padded input slab for this n (bf16, lanes = W*Cin)
    # b_ref: (9, Wp*Cin, W*Cout)   banded-in-W weights, one matrix per (kt, kh) tap
    # o_ref: (1, TT, H, W*Cout)    output chunk (bf16, lane-dense, unpadded Cout)
    tb = pl.program_id(1)
    t0 = pl.multiple_of(tb * TT, TT)           # first padded input frame of this chunk

    acc = jnp.zeros((TT * H, WCo), jnp.float32)
    for kt in range(3):
        for kh in range(3):
            # (kt, kh) tap: contiguous-lane window, no kw shifting / no im2col slab.
            win = x_ref[0, pl.ds(t0 + kt * dil, TT), kh:kh + H, :]   # (TT, H, Wp*Cin)
            acc = acc + jnp.dot(win.reshape(TT * H, WpC),
                                b_ref[3 * kt + kh],
                                preferred_element_type=jnp.float32)

    acc = jnp.where(acc >= 0, acc, NEG_SLOPE * acc)                  # leaky_relu
    o_ref[0] = acc.reshape(TT, H, WCo).astype(o_ref.dtype)


def _pick_tt(T, H, Tp, Hp, WpC, WCo, budget_bytes=20 * 1024 * 1024):
    """Largest divisor of T whose VMEM footprint fits the budget (v7x-safe)."""
    fixed = 2 * Tp * Hp * WpC * 2 + 2 * 9 * WpC * WCo * 2     # input + weight (double-buffered)
    for tt in sorted((t for t in range(1, T + 1) if T % t == 0), reverse=True):
        per = 2 * tt * H * WCo * 2 + tt * H * WCo * 4 + 2 * tt * H * WpC * 2
        if fixed + per <= budget_bytes:
            return tt
    return 1


def basic_conv3d3_forward(x_ncdhw, weight_oidhw, dilation=1,
                          compute_dtype=jnp.bfloat16):
    """Forward of BasicConv3d3.  x: (N, Cin, T, H, W); weight: (Cout, Cin, 3, 3, 3)."""
    N, Cin, T, H, W = x_ncdhw.shape
    Cout = weight_oidhw.shape[0]
    d = int(dilation)
    out_dtype = x_ncdhw.dtype

    # ---- input layout glue: NCDHW -> channels-last, pad, fold W*Cin into lanes ----
    x = jnp.transpose(x_ncdhw, (0, 2, 3, 4, 1)).astype(compute_dtype)   # (N,T,H,W,Cin)
    x = jnp.pad(x, ((0, 0), (d, d), (1, 1), (1, 1), (0, 0)))            # (N,Tp,Hp,Wp,Cin)
    Tp, Hp, Wp = T + 2 * d, H + 2, W + 2
    x = x.reshape(N, Tp, Hp, Wp * Cin)
    WpC, WCo = Wp * Cin, W * Cout

    # ---- banded ("Toeplitz-in-W") weights, one (Wp*Cin, W*Cout) matrix per (kt,kh) ----
    # B[kt*3+kh][w'*Cin+ci, w*Cout+co] = wgt[co,ci,kt,kh,w'-w] if 0 <= w'-w <= 2 else 0
    w_t = jnp.transpose(weight_oidhw, (2, 3, 4, 1, 0))                  # (kt,kh,kw,ci,co)
    off = jnp.arange(Wp)[:, None] - jnp.arange(W)[None, :]              # (Wp, W) = w' - w
    valid = (off >= 0) & (off <= 2)
    band = w_t[:, :, jnp.clip(off, 0, 2), :, :]                         # (3,3,Wp,W,ci,co)
    band = jnp.where(valid[None, None, :, :, None, None], band, 0.0)
    band = jnp.transpose(band, (0, 1, 2, 4, 3, 5)).reshape(9, WpC, WCo)
    band = band.astype(compute_dtype)

    TT = _pick_tt(T, H, Tp, Hp, WpC, WCo)

    kernel = partial(_conv3d_lrelu_kernel, H=H, WpC=WpC, WCo=WCo, TT=TT, dil=d)

    out = pl.pallas_call(
        kernel,
        out_shape=jax.ShapeDtypeStruct((N, T, H, WCo), compute_dtype),
        grid=(N, T // TT),
        in_specs=[
            # whole padded slab of one batch element; block index constant along the
            # temporal grid axis -> DMA'd once per n and reused by every chunk.
            pl.BlockSpec((1, Tp, Hp, WpC), lambda n, tb: (n, 0, 0, 0)),
            pl.BlockSpec((9, WpC, WCo), lambda n, tb: (0, 0, 0)),
        ],
        out_specs=pl.BlockSpec((1, TT, H, WCo), lambda n, tb: (n, tb, 0, 0)),
        compiler_params=pltpu.CompilerParams(
            dimension_semantics=("parallel", "arbitrary"),
            vmem_limit_bytes=32 * 1024 * 1024),
    )(x, band)

    # layout glue back to PyTorch NCDHW (and original dtype)
    out = out.reshape(N, T, H, W, Cout).astype(out_dtype)
    return jnp.transpose(out, (0, 4, 1, 2, 3))


def _reference(x, weight, dilation):
    # XLA reference on the same bf16-rounded operands, f32 accumulation.
    xb = x.astype(jnp.bfloat16).astype(jnp.float32)
    wb = weight.astype(jnp.bfloat16).astype(jnp.float32)
    ref = jax.lax.conv_general_dilated(
        xb, wb, window_strides=(1, 1, 1),
        padding=[(dilation, dilation), (1, 1), (1, 1)],
        rhs_dilation=(dilation, 1, 1),
        dimension_numbers=("NCDHW", "OIDHW", "NCDHW"))
    return jnp.where(ref >= 0, ref, NEG_SLOPE * ref)


if __name__ == "__main__":
    key = jax.random.PRNGKey(0)
    kx, kw = jax.random.split(key)

    # small shapes consistent with the module: (N, Cin, T, H, W)
    N, Cin, Cout, T, H, W = 2, 4, 8, 8, 16, 16

    x = jax.random.normal(kx, (N, Cin, T, H, W), dtype=jnp.float32)
    fan_in = Cin * 3 * 3 * 3
    weight = jax.random.normal(kw, (Cout, Cin, 3, 3, 3),
                               dtype=jnp.float32) / jnp.sqrt(fan_in)

    for dilation in (1, 2):
        fwd = jax.jit(partial(basic_conv3d3_forward, dilation=dilation))
        out = jax.block_until_ready(fwd(x, weight))
        ref = _reference(x, weight, dilation)
        assert out.shape == (N, Cout, T, H, W), out.shape
        assert jnp.allclose(out, ref, atol=1e-2, rtol=1e-2), \
            float(jnp.max(jnp.abs(out - ref)))

    print("KERNEL_OK")
</pallas_src>

<mosaic_0001>
module attributes {stable_mosaic.version = 11 : i64} {
  func.func @_conv3d_lrelu_kernel(%arg0: i32, %arg1: i32, %arg2: memref<1x10x18x72xbf16, #tpu.memory_space<vmem>>, %arg3: memref<9x72x128xbf16, #tpu.memory_space<vmem>>, %arg4: memref<1x8x16x128xbf16, #tpu.memory_space<vmem>>) attributes {dimension_semantics = [#tpu.dimension_semantics<parallel>, #tpu.dimension_semantics<arbitrary>], iteration_bounds = array<i64: 2, 1>, scalar_prefetch = 0 : i64, scratch_operands = 0 : i64, tpu.core_type = #tpu.core_type<tc>, window_params = [{transform_indices = @transform_0, window_bounds = array<i64: 1, 10, 18, 72>}, {pipeline_mode = #tpu.pipeline_mode<synchronous>, transform_indices = @transform_1, window_bounds = array<i64: 9, 72, 128>}, {transform_indices = @transform_2, window_bounds = array<i64: 1, 8, 16, 128>}]} {
    %c8_i32 = arith.constant 8 : i32
    %0 = arith.muli %arg1, %c8_i32 : i32
    %1 = tpu.assume_multiple %0, 8 : i32
    %cst = arith.constant 0.000000e+00 : f32
    %2 = vector.broadcast %cst : f32 to vector<128x128xf32>
    %c0_i32 = arith.constant 0 : i32
    %3 = arith.addi %1, %c0_i32 : i32
    %c0 = arith.constant 0 : index
    %4 = arith.index_cast %3 : i32 to index
    %c0_0 = arith.constant 0 : index
    %c0_1 = arith.constant 0 : index
    %5 = vector.load %arg2[%c0, %4, %c0_0, %c0_1] : memref<1x10x18x72xbf16, #tpu.memory_space<vmem>>, vector<1x8x16x72xbf16>
    %6 = vector.shape_cast %5 : vector<1x8x16x72xbf16> to vector<8x16x72xbf16>
    %7 = vector.shape_cast %6 : vector<8x16x72xbf16> to vector<128x72xbf16>
    %c0_2 = arith.constant 0 : index
    %c0_3 = arith.constant 0 : index
    %c0_4 = arith.constant 0 : index
    %8 = vector.load %arg3[%c0_2, %c0_3, %c0_4] : memref<9x72x128xbf16, #tpu.memory_space<vmem>>, vector<1x72x128xbf16>
    %9 = vector.shape_cast %8 : vector<1x72x128xbf16> to vector<72x128xbf16>
    %cst_5 = arith.constant dense<0.000000e+00> : vector<128x128xf32>
    %10 = tpu.matmul %7, %9, %cst_5 {dimension_numbers = #tpu.dot_dimension_numbers<[1], [0], [0], [1], [0, 0, 1, 1], [], []>} : vector<128x72xbf16>, vector<72x128xbf16>, vector<128x128xf32> -> vector<128x128xf32>
    %11 = arith.addf %2, %10 : vector<128x128xf32>
    %c0_i32_6 = arith.constant 0 : i32
    %12 = arith.addi %1, %c0_i32_6 : i32
    %c0_7 = arith.constant 0 : index
    %13 = arith.index_cast %12 : i32 to index
    %c1 = arith.constant 1 : index
    %c0_8 = arith.constant 0 : index
    %14 = vector.load %arg2[%c0_7, %13, %c1, %c0_8] : memref<1x10x18x72xbf16, #tpu.memory_space<vmem>>, vector<1x8x16x72xbf16>
    %15 = vector.shape_cast %14 : vector<1x8x16x72xbf16> to vector<8x16x72xbf16>
    %16 = vector.shape_cast %15 : vector<8x16x72xbf16> to vector<128x72xbf16>
    %c1_9 = arith.constant 1 : index
    %c0_10 = arith.constant 0 : index
    %c0_11 = arith.constant 0 : index
    %17 = vector.load %arg3[%c1_9, %c0_10, %c0_11] : memref<9x72x128xbf16, #tpu.memory_space<vmem>>, vector<1x72x128xbf16>
    %18 = vector.shape_cast %17 : vector<1x72x128xbf16> to vector<72x128xbf16>
    %cst_12 = arith.constant dense<0.000000e+00> : vector<128x128xf32>
    %19 = tpu.matmul %16, %18, %cst_12 {dimension_numbers = #tpu.dot_dimension_numbers<[1], [0], [0], [1], [0, 0, 1, 1], [], []>} : vector<128x72xbf16>, vector<72x128xbf16>, vector<128x128xf32> -> vector<128x128xf32>
    %20 = arith.addf %11, %19 : vector<128x128xf32>
    %c0_i32_13 = arith.constant 0 : i32
    %21 = arith.addi %1, %c0_i32_13 : i32
    %c0_14 = arith.constant 0 : index
    %22 = arith.index_cast %21 : i32 to index
    %c2 = arith.constant 2 : index
    %c0_15 = arith.constant 0 : index
    %23 = vector.load %arg2[%c0_14, %22, %c2, %c0_15] : memref<1x10x18x72xbf16, #tpu.memory_space<vmem>>, vector<1x8x16x72xbf16>
    %24 = vector.shape_cast %23 : vector<1x8x16x72xbf16> to vector<8x16x72xbf16>
    %25 = vector.shape_cast %24 : vector<8x16x72xbf16> to vector<128x72xbf16>
    %c2_16 = arith.constant 2 : index
    %c0_17 = arith.constant 0 : index
    %c0_18 = arith.constant 0 : index
    %26 = vector.load %arg3[%c2_16, %c0_17, %c0_18] : memref<9x72x128xbf16, #tpu.memory_space<vmem>>, vector<1x72x128xbf16>
    %27 = vector.shape_cast %26 : vector<1x72x128xbf16> to vector<72x128xbf16>
    %cst_19 = arith.constant dense<0.000000e+00> : vector<128x128xf32>
    %28 = tpu.matmul %25, %27, %cst_19 {dimension_numbers = #tpu.dot_dimension_numbers<[1], [0], [0], [1], [0, 0, 1, 1], [], []>} : vector<128x72xbf16>, vector<72x128xbf16>, vector<128x128xf32> -> vector<128x128xf32>
    %29 = arith.addf %20, %28 : vector<128x128xf32>
    %c1_i32 = arith.constant 1 : i32
    %30 = arith.addi %1, %c1_i32 : i32
    %c0_20 = arith.constant 0 : index
    %31 = arith.index_cast %30 : i32 to index
    %c0_21 = arith.constant 0 : index
    %c0_22 = arith.constant 0 : index
    %32 = vector.load %arg2[%c0_20, %31, %c0_21, %c0_22] : memref<1x10x18x72xbf16, #tpu.memory_space<vmem>>, vector<1x8x16x72xbf16>
    %33 = vector.shape_cast %32 : vector<1x8x16x72xbf16> to vector<8x16x72xbf16>
    %34 = vector.shape_cast %33 : vector<8x16x72xbf16> to vector<128x72xbf16>
    %c3 = arith.constant 3 : index
    %c0_23 = arith.constant 0 : index
    %c0_24 = arith.constant 0 : index
    %35 = vector.load %arg3[%c3, %c0_23, %c0_24] : memref<9x72x128xbf16, #tpu.memory_space<vmem>>, vector<1x72x128xbf16>
    %36 = vector.shape_cast %35 : vector<1x72x128xbf16> to vector<72x128xbf16>
    %cst_25 = arith.constant dense<0.000000e+00> : vector<128x128xf32>
    %37 = tpu.matmul %34, %36, %cst_25 {dimension_numbers = #tpu.dot_dimension_numbers<[1], [0], [0], [1], [0, 0, 1, 1], [], []>} : vector<128x72xbf16>, vector<72x128xbf16>, vector<128x128xf32> -> vector<128x128xf32>
    %38 = arith.addf %29, %37 : vector<128x128xf32>
    %c1_i32_26 = arith.constant 1 : i32
    %39 = arith.addi %1, %c1_i32_26 : i32
    %c0_27 = arith.constant 0 : index
    %40 = arith.index_cast %39 : i32 to index
    %c1_28 = arith.constant 1 : index
    %c0_29 = arith.constant 0 : index
    %41 = vector.load %arg2[%c0_27, %40, %c1_28, %c0_29] : memref<1x10x18x72xbf16, #tpu.memory_space<vmem>>, vector<1x8x16x72xbf16>
    %42 = vector.shape_cast %41 : vector<1x8x16x72xbf16> to vector<8x16x72xbf16>
    %43 = vector.shape_cast %42 : vector<8x16x72xbf16> to vector<128x72xbf16>
    %c4 = arith.constant 4 : index
    %c0_30 = arith.constant 0 : index
    %c0_31 = arith.constant 0 : index
    %44 = vector.load %arg3[%c4, %c0_30, %c0_31] : memref<9x72x128xbf16, #tpu.memory_space<vmem>>, vector<1x72x128xbf16>
    %45 = vector.shape_cast %44 : vector<1x72x128xbf16> to vector<72x128xbf16>
    %cst_32 = arith.constant dense<0.000000e+00> : vector<128x128xf32>
    %46 = tpu.matmul %43, %45, %cst_32 {dimension_numbers = #tpu.dot_dimension_numbers<[1], [0], [0], [1], [0, 0, 1, 1], [], []>} : vector<128x72xbf16>, vector<72x128xbf16>, vector<128x128xf32> -> vector<128x128xf32>
    %47 = arith.addf %38, %46 : vector<128x128xf32>
    %c1_i32_33 = arith.constant 1 : i32
    %48 = arith.addi %1, %c1_i32_33 : i32
    %c0_34 = arith.constant 0 : index
    %49 = arith.index_cast %48 : i32 to index
    %c2_35 = arith.constant 2 : index
    %c0_36 = arith.constant 0 : index
    %50 = vector.load %arg2[%c0_34, %49, %c2_35, %c0_36] : memref<1x10x18x72xbf16, #tpu.memory_space<vmem>>, vector<1x8x16x72xbf16>
    %51 = vector.shape_cast %50 : vector<1x8x16x72xbf16> to vector<8x16x72xbf16>
    %52 = vector.shape_cast %51 : vector<8x16x72xbf16> to vector<128x72xbf16>
    %c5 = arith.constant 5 : index
    %c0_37 = arith.constant 0 : index
    %c0_38 = arith.constant 0 : index
    %53 = vector.load %arg3[%c5, %c0_37, %c0_38] : memref<9x72x128xbf16, #tpu.memory_space<vmem>>, vector<1x72x128xbf16>
    %54 = vector.shape_cast %53 : vector<1x72x128xbf16> to vector<72x128xbf16>
    %cst_39 = arith.constant dense<0.000000e+00> : vector<128x128xf32>
    %55 = tpu.matmul %52, %54, %cst_39 {dimension_numbers = #tpu.dot_dimension_numbers<[1], [0], [0], [1], [0, 0, 1, 1], [], []>} : vector<128x72xbf16>, vector<72x128xbf16>, vector<128x128xf32> -> vector<128x128xf32>
    %56 = arith.addf %47, %55 : vector<128x128xf32>
    %c2_i32 = arith.constant 2 : i32
    %57 = arith.addi %1, %c2_i32 : i32
    %c0_40 = arith.constant 0 : index
    %58 = arith.index_cast %57 : i32 to index
    %c0_41 = arith.constant 0 : index
    %c0_42 = arith.constant 0 : index
    %59 = vector.load %arg2[%c0_40, %58, %c0_41, %c0_42] : memref<1x10x18x72xbf16, #tpu.memory_space<vmem>>, vector<1x8x16x72xbf16>
    %60 = vector.shape_cast %59 : vector<1x8x16x72xbf16> to vector<8x16x72xbf16>
    %61 = vector.shape_cast %60 : vector<8x16x72xbf16> to vector<128x72xbf16>
    %c6 = arith.constant 6 : index
    %c0_43 = arith.constant 0 : index
    %c0_44 = arith.constant 0 : index
    %62 = vector.load %arg3[%c6, %c0_43, %c0_44] : memref<9x72x128xbf16, #tpu.memory_space<vmem>>, vector<1x72x128xbf16>
    %63 = vector.shape_cast %62 : vector<1x72x128xbf16> to vector<72x128xbf16>
    %cst_45 = arith.constant dense<0.000000e+00> : vector<128x128xf32>
    %64 = tpu.matmul %61, %63, %cst_45 {dimension_numbers = #tpu.dot_dimension_numbers<[1], [0], [0], [1], [0, 0, 1, 1], [], []>} : vector<128x72xbf16>, vector<72x128xbf16>, vector<128x128xf32> -> vector<128x128xf32>
    %65 = arith.addf %56, %64 : vector<128x128xf32>
    %c2_i32_46 = arith.constant 2 : i32
    %66 = arith.addi %1, %c2_i32_46 : i32
    %c0_47 = arith.constant 0 : index
    %67 = arith.index_cast %66 : i32 to index
    %c1_48 = arith.constant 1 : index
    %c0_49 = arith.constant 0 : index
    %68 = vector.load %arg2[%c0_47, %67, %c1_48, %c0_49] : memref<1x10x18x72xbf16, #tpu.memory_space<vmem>>, vector<1x8x16x72xbf16>
    %69 = vector.shape_cast %68 : vector<1x8x16x72xbf16> to vector<8x16x72xbf16>
    %70 = vector.shape_cast %69 : vector<8x16x72xbf16> to vector<128x72xbf16>
    %c7 = arith.constant 7 : index
    %c0_50 = arith.constant 0 : index
    %c0_51 = arith.constant 0 : index
    %71 = vector.load %arg3[%c7, %c0_50, %c0_51] : memref<9x72x128xbf16, #tpu.memory_space<vmem>>, vector<1x72x128xbf16>
    %72 = vector.shape_cast %71 : vector<1x72x128xbf16> to vector<72x128xbf16>
    %cst_52 = arith.constant dense<0.000000e+00> : vector<128x128xf32>
    %73 = tpu.matmul %70, %72, %cst_52 {dimension_numbers = #tpu.dot_dimension_numbers<[1], [0], [0], [1], [0, 0, 1, 1], [], []>} : vector<128x72xbf16>, vector<72x128xbf16>, vector<128x128xf32> -> vector<128x128xf32>
    %74 = arith.addf %65, %73 : vector<128x128xf32>
    %c2_i32_53 = arith.constant 2 : i32
    %75 = arith.addi %1, %c2_i32_53 : i32
    %c0_54 = arith.constant 0 : index
    %76 = arith.index_cast %75 : i32 to index
    %c2_55 = arith.constant 2 : index
    %c0_56 = arith.constant 0 : index
    %77 = vector.load %arg2[%c0_54, %76, %c2_55, %c0_56] : memref<1x10x18x72xbf16, #tpu.memory_space<vmem>>, vector<1x8x16x72xbf16>
    %78 = vector.shape_cast %77 : vector<1x8x16x72xbf16> to vector<8x16x72xbf16>
    %79 = vector.shape_cast %78 : vector<8x16x72xbf16> to vector<128x72xbf16>
    %c8 = arith.constant 8 : index
    %c0_57 = arith.constant 0 : index
    %c0_58 = arith.constant 0 : index
    %80 = vector.load %arg3[%c8, %c0_57, %c0_58] : memref<9x72x128xbf16, #tpu.memory_space<vmem>>, vector<1x72x128xbf16>
    %81 = vector.shape_cast %80 : vector<1x72x128xbf16> to vector<72x128xbf16>
    %cst_59 = arith.constant dense<0.000000e+00> : vector<128x128xf32>
    %82 = tpu.matmul %79, %81, %cst_59 {dimension_numbers = #tpu.dot_dimension_numbers<[1], [0], [0], [1], [0, 0, 1, 1], [], []>} : vector<128x72xbf16>, vector<72x128xbf16>, vector<128x128xf32> -> vector<128x128xf32>
    %83 = arith.addf %74, %82 : vector<128x128xf32>
    %cst_60 = arith.constant 0.000000e+00 : f32
    %84 = vector.broadcast %cst_60 : f32 to vector<128x128xf32>
    %85 = arith.cmpf oge, %83, %84 : vector<128x128xf32>
    %cst_61 = arith.constant 0.00999999977 : f32
    %86 = vector.broadcast %cst_61 : f32 to vector<128x128xf32>
    %87 = arith.mulf %86, %83 : vector<128x128xf32>
    %88 = arith.select %85, %83, %87 : vector<128x128xi1>, vector<128x128xf32>
    %89 = vector.shape_cast %88 : vector<128x128xf32> to vector<8x16x128xf32>
    %90 = arith.truncf %89 : vector<8x16x128xf32> to vector<8x16x128xbf16>
    %c0_62 = arith.constant 0 : index
    %c0_63 = arith.constant 0 : index
    %c0_64 = arith.constant 0 : index
    %c0_65 = arith.constant 0 : index
    %91 = vector.load %arg4[%c0_62, %c0_63, %c0_64, %c0_65] : memref<1x8x16x128xbf16, #tpu.memory_space<vmem>>, vector<1x8x16x128xbf16>
    %92 = vector.shape_cast %91 : vector<1x8x16x128xbf16> to vector<8x16x128xbf16>
    %93 = vector.shape_cast %90 : vector<8x16x128xbf16> to vector<1x8x16x128xbf16>
    tpu.vector_store %arg4[%c0_62, %c0_63, %c0_64, %c0_65], %93 {strides = array<i32>} : memref<1x8x16x128xbf16, #tpu.memory_space<vmem>>, vector<1x8x16x128xbf16>,
    return
  }
  func.func @transform_0(%arg0: i32, %arg1: i32) -> (i32, i32, i32, i32) {
    %c0_i32 = arith.constant 0 : i32
    %c0_i32_0 = arith.constant 0 : i32
    %c0_i32_1 = arith.constant 0 : i32
    %c0_i32_2 = arith.constant 0 : i32
    return %arg0, %c0_i32, %c0_i32_0, %c0_i32_1 : i32, i32, i32, i32
  }
  func.func @transform_1(%arg0: i32, %arg1: i32) -> (i32, i32, i32) {
    %c0_i32 = arith.constant 0 : i32
    %c0_i32_0 = arith.constant 0 : i32
    %c0_i32_1 = arith.constant 0 : i32
    %c0_i32_2 = arith.constant 0 : i32
    return %c0_i32, %c0_i32_0, %c0_i32_1 : i32, i32, i32
  }
  func.func @transform_2(%arg0: i32, %arg1: i32) -> (i32, i32, i32, i32) {
    %c0_i32 = arith.constant 0 : i32
    %c0_i32_0 = arith.constant 0 : i32
    %c0_i32_1 = arith.constant 0 : i32
    return %arg0, %arg1, %c0_i32, %c0_i32_0 : i32, i32, i32, i32
  }
}

</mosaic_0001>

<bundles_post_ra>
// kernel: basic_conv3d3_forward.1
= control target key start
LH: loop header
LB: loop body
LE: loop exit
PB: predicated region body
PF: predicated region fallthrough
CT: control target
= control target key end

     0   :  { %s4281_s9 = smov 0   ;;  %s4283_s10 = smov 0   ;;  %s5350_s0 = inlined_call_operand.vmem [shape: bf16[2,10,18,72], index: 0, kind: input, shape index: {}]   ;;  %s5351_s1 = inlined_call_operand.vmem [shape: bf16[9,72,128], index: 1, kind: input, shape index: {}]   ;;  %s5352_s2 = inlined_call_operand.vmem [shape: bf16[2,8,16,128], index: 2, kind: output, shape index: {}]  }
   0x1   :  { %s4285_s11 = smov 0  }
   0x2 LB: > { %s24_s12 = sadd.s32 1, %s4260_s10  ;;  %p3179_p0 = scmp.ge.s32.totalorder %s4264_s11, 1  ;;  %s4264_s11 = sphi %s4285_s11, %s12_s11   ;;  %s4260_s10 = sphi %s4283_s10, %s5370_s10   ;;  %s4256_s9 = sphi %s4281_s9, %s5369_s9  }
   0x3   : > { %p26_p1 = scmp.ge.s32.totalorder %s24_s12, 2  ;;  %p126_p2 = scmp.lt.s32.totalorder %s4264_s11, 3 }
   0x5   : > { %s5372_s12 = smov (%p26_p1, %s24_s12), 0  ;;  %p127_p3 = pnand %p3179_p0, %p126_p2 }
   0x7   : > { %130 = sbr.rel (%p127_p3) target bundleno = 431 (0x1af), region = 28 }
   0xe   : > { %v4170_v0 = vld [vmem:[%s5351_s1 + $0x24] sm:$0xff]   ;;  %v4171_v1 = vld [vmem:[%s5351_s1 + $0x90] sm:$0xff]   ;;  %p153_p4 = scmp.lt.s32.totalorder %s4256_s9, 1  ;;  %v4173_v3 = vld [vmem:[%s5351_s1 + $0x98] sm:$0xff]   ;;  %vm488_vm0 = vcmask 1043456   ;;  %vm463_vm3 = vcmask 588800  }
   0xf   : > { %3763 = vmatprep.subr.bf16.mxu1 %v4170_v0  ;;  %v4172_v2 = vld [vmem:[%s5351_s1 + $0x2c] sm:$0xff]   ;;  %3867 = vmatprep.subr.bf16.mxu0 %v4171_v1  ;;  %v4174_v4 = vld [vmem:[%s5351_s1 + $0x34] sm:$0xff]   ;;  %v4175_v5 = vld [vmem:[%s5351_s1 + $0xa0] sm:$0xff]   ;;  %vm207_vm1 = vsmask.f32 3328  ;;  %vm804_vm5 = vcmask 1042432  }
  0x10   : > { %3764 = vmatpush3.bf16.msra.mxu1 %v4170_v0  ;;  %s5374_s9 = smov (!%p153_p4, %s4256_s9), 1  ;;  %3868 = vmatpush3.bf16.msra.mxu0 %v4171_v1  ;;  %v4176_v6 = vld [vmem:[%s5351_s1 + $0x3c] sm:$0xff]   ;;  %v4178_v7 = vld [vmem:[%s5351_s1 + $0x44] ss:$0 sps:$4 sm:$0xff]   ;;  %v4177_v8 = vld [vmem:[%s5351_s1 + $0xa8] sm:$0xff]   ;;  %vm805_vm6 = vcmask 1046532  }
  0x11   : > { %3765 = vmatprep.subr.bf16.mxu1 %v4172_v2  ;;  %3869 = vmatprep.subr.bf16.mxu0 %v4173_v3  ;;  %s4145_s25 = smul.u32 120, %s5374_s9  ;;  %v4179_v11 = vld [vmem:[%s5351_s1 + $0xb0] ss:$0 sps:$4 sm:$0xff]   ;;  %vm208_vm2 = vsmask.f32 7440  ;;  %v490_v16 = vsel %vm488_vm0, %v4178_v7, 0  ;;  %vm4676_vm7 = vmor %vm804_vm5, %vm805_vm6 }
  0x12   : > { %v1603_v25 = vsel %vm488_vm0, %v4179_v11, 0  ;;  %vm4369_vm4 = vmor %vm207_vm1, %vm208_vm2  ;;  %v4379_v40 = vld [vmem:[%s5351_s1] sm:$0xff]   ;;  %v4385_v44 = vld [vmem:[%s5351_s1 + $0xb4] sm:$0xff]  }
  0x13   : > { %s4326_s30 = scalar_lea.vmem %s5350_s0, %s4145_s25 }
  0x14   : > { %3766 = vmatpush3.bf16.msra.mxu1 %v4172_v2  ;;  %3870 = vmatpush3.bf16.msra.mxu0 %v4173_v3  ;;  %v4335_v9 = vld [vmem:[%s4326_s30] sm:$0xf]  ;;  %v4338_v10 = vld [vmem:[%s4326_s30 + $0x4] sm:$0xf]  ;;  %v4344_v12 = vld [vmem:[%s4326_s30 + $0x8] sm:$0x1] }
  0x15   : > { %3767 = vmatprep.subr.bf16.mxu1 %v4174_v4  ;;  %3871 = vmatprep.subr.bf16.mxu0 %v4175_v5  ;;  %v211_v13 = vshrl.u32 %v4335_v9, 16  ;;  %v214_v14 = vshll.u32 %v4335_v9, 16  ;;  %v220_v15 = vshll.u32 %v4338_v10, 16  ;;  %v224_v18 = vshrl.u32 %v4338_v10, 16  ;;  %v3318_v20 = vld [vmem:[%s4326_s30 + $0xc] sm:$0xf] }
  0x16   : > { %v230_v19 = vshll.u32 %v4344_v12, 16  ;;  %v4354_v23 = vld [vmem:[%s4326_s30 + $0x10] sm:$0xf]  ;;  %v4357_v24 = vld [vmem:[%s4326_s30 + $0x14] sm:$0x1]  ;;  %v1326_v27 = vshrl.u32 %v3318_v20, 16 }
  0x17   : > { %v213_v17 = vrot.slane %v211_v13, 4  ;;  %v216_v21 = vrot.slane %v214_v14, 5  ;;  %v222_v22 = vrot.slane %v220_v15, 5  ;;  %v226_v26 = vrot.slane %v224_v18, 4  ;;  %v4364_v33 = vld [vmem:[%s4326_s30 + $0xc] sm:$0xf] }
  0x18   : > { %3768 = vmatpush3.bf16.msra.mxu1 %v4174_v4  ;;  %3872 = vmatpush3.bf16.msra.mxu0 %v4175_v5  ;;  %v1329_v28 = vshll.u32 %v3318_v20, 16  ;;  %v1335_v30 = vshll.u32 %v4354_v23, 16  ;;  %v1339_v31 = vshrl.u32 %v4354_v23, 16  ;;  %v1345_v32 = vshll.u32 %v4357_v24, 16  ;;  %v4374_v39 = vld [vmem:[%s4326_s30 + $0x10] sm:$0xf] }
  0x19   : > { %3769 = vmatprep.subr.bf16.mxu1 %v4176_v6  ;;  %3873 = vmatprep.subr.bf16.mxu0 %v4177_v8  ;;  %v217_v29 = vor.u32 %v216_v21, %v213_v17  ;;  %v227_v35 = vor.u32 %v226_v26, %v222_v22  ;;  %v232_v36 = vrot.slane %v230_v19, 5  ;;  %v1328_v37 = vrot.slane %v1326_v27, 4  ;;  %v4391_v51 = vld [vmem:[%s4326_s30 + $0x14] sm:$0x1]  ;;  %v3321_v58 = vld [vmem:[%s4326_s30 + $0x18] sm:$0xf] }
  0x1a   : > { %v1331_v38 = vrot.slane %v1329_v28, 5  ;;  %v1337_v42 = vrot.slane %v1335_v30, 5  ;;  %v1341_v43 = vrot.slane %v1339_v31, 4  ;;  %v1347_v47 = vrot.slane %v1345_v32, 5  ;;  %v4405_v2 = vld [vmem:[%s4326_s30 + $0x1c] sm:$0xf] }
  0x1b   : > { %v218_v41 = vrot.slane %v217_v29, 4  ;;  %v228_v45 = vrot.slane %v227_v35, 4  ;;  %v235_v48 = vshrl.u32 %v4364_v33, 16  ;;  %v238_v52 = vshll.u32 %v4364_v33, 16  ;;  %v4425_v29 = vld [vmem:[%s4326_s30 + $0x1c] sm:$0xf] }
  0x1c   : > { %3770 = vmatpush3.bf16.msra.mxu1 %v4176_v6  ;;  %3874 = vmatpush3.bf16.msra.mxu0 %v4177_v8  ;;  %v1332_v46 = vor.u32 %v1331_v38, %v1328_v37  ;;  %v1342_v50 = vor.u32 %v1341_v43, %v1337_v42  ;;  %v244_v53 = vshll.u32 %v4374_v39, 16  ;;  %v248_v57 = vshrl.u32 %v4374_v39, 16  ;;  %v4412_v6 = vld [vmem:[%s4326_s30 + $0x20] sm:$0x1]  ;;  %v3324_v38 = vld [vmem:[%s4326_s30 + $0x24] sm:$0xf] }
  0x1d   : > { %4135 = vmatprep.subr.msk.bf16.mxu1 %vm488_vm0, %v4178_v7  ;;  %4139 = vmatprep.subr.msk.bf16.mxu0 %vm488_vm0, %v4179_v11  ;;  %v223_v49 = vsel %vm4369_vm4, %v218_v41, %v222_v22  ;;  %v233_v54 = vsel %vm4369_vm4, %v228_v45, %v232_v36  ;;  %v237_v56 = vrot.slane %v235_v48, 4  ;;  %v240_v61 = vrot.slane %v238_v52, 5  ;;  %v201_v30 = vld [vmem:[%s4326_s30 + $0x20] sm:$0x1]  ;;  %v4442_v52 = vld [vmem:[%s4326_s30 + $0x28] sm:$0xf] }
  0x1e   : > { %v1333_v55 = vrot.slane %v1332_v46, 4  ;;  %v3192_v59 = vcombine.low %v223_v49, %v233_v54  ;;  %v1343_v60 = vrot.slane %v1342_v50, 4  ;;  %v246_v62 = vrot.slane %v244_v53, 5  ;;  %v4182_v46 = vld [vmem:[%s5351_s1 + $0x8] sm:$0xff]   ;;  %v4617_v31 = vld [vmem:[%s4326_s30 + $0x54] sm:$0xf] }
  0x1f   : > { %v250_v0 = vrot.slane %v248_v57, 4  ;;  %v254_v1 = vshll.u32 %v4391_v51, 16  ;;  %v241_v5 = vor.u32 %v240_v61, %v237_v56  ;;  %v1350_v7 = vshrl.u32 %v3321_v58, 16  ;;  %v4446_v56 = vld [vmem:[%s4326_s30 + $0x2c] sm:$0x1]  ;;  %5357 = vst [vmem:[#allocation2_spill] sm:$0xff] %v4617_v31 }
  0x20   : > { %3772 = vmatpush3.bf16.msra.mxu1 %v490_v16  ;;  %3876 = vmatpush3.bf16.msra.mxu0 %v1603_v25  ;;  %v1338_v63 = vsel %vm4369_vm4, %v1333_v55, %v1337_v42  ;;  %v1348_v3 = vsel %vm4369_vm4, %v1343_v60, %v1347_v47  ;;  %v1353_v14 = vshll.u32 %v3321_v58, 16  ;;  %v1359_v17 = vshll.u32 %v4405_v2, 16  ;;  %v4420_v25 = vld [vmem:[%s4326_s30 + $0x18] sm:$0xf]  ;;  %v4648_v4 = vld [vmem:[%s4326_s30 + $0x68] sm:$0x1] }
  0x21   : > { %3789 = vmatprep.subr.bf16.mxu1 %v4379_v40  ;;  %3893 = vmatprep.subr.bf16.mxu0 %v4385_v44  ;;  %v3351_v8 = vcombine.low %v1338_v63, %v1348_v3  ;;  %v251_v11 = vor.u32 %v250_v0, %v246_v62  ;;  %v256_v13 = vrot.slane %v254_v1, 5  ;;  %v242_v15 = vrot.slane %v241_v5, 4  ;;  %v4183_v5 = vld [vmem:[%s5351_s1 + $0xbc] sm:$0xff]  }
  0x22   : > { %3773 = vmatprep.mubr.msk.bf16.mxu1 %vm463_vm3, %v3192_v59  ;;  %v1352_v16 = vrot.slane %v1350_v7, 4  ;;  %v1363_v18 = vshrl.u32 %v4405_v2, 16  ;;  %v1355_v21 = vrot.slane %v1353_v14, 5  ;;  %v1369_v22 = vshll.u32 %v4412_v6, 16  ;;  %v4460_v7 = vld [vmem:[%s4326_s30 + $0x28] sm:$0xf] }
  0x23   : > { %3877 = vmatprep.mubr.msk.bf16.mxu0 %vm463_vm3, %v3351_v8  ;;  %v252_v20 = vrot.slane %v251_v11, 4  ;;  %v247_v26 = vsel %vm4369_vm4, %v242_v15, %v246_v62  ;;  %v1361_v27 = vrot.slane %v1359_v17, 5  ;;  %v259_v43 = vshrl.u32 %v4420_v25, 16  ;;  %v4452_v62 = vld [vmem:[%s4326_s30 + $0x24] sm:$0xf] }
  0x24   : > { %v1365_v28 = vrot.slane %v1363_v18, 4  ;;  %v1356_v35 = vor.u32 %v1355_v21, %v1352_v16  ;;  %v1371_v36 = vrot.slane %v1369_v22, 5  ;;  %v262_v45 = vshll.u32 %v4420_v25, 16  ;;  %v4468_v15 = vld [vmem:[%s4326_s30 + $0x2c] sm:$0x1] }
  0x25   : > { %v257_v32 = vsel %vm4369_vm4, %v252_v20, %v256_v13  ;;  %v268_v48 = vshll.u32 %v4425_v29, 16  ;;  %v272_v49 = vshrl.u32 %v4425_v29, 16  ;;  %v278_v50 = vshll.u32 %v201_v30, 16 }
  0x26   : > { %v3193_v41 = vcombine.low %v247_v26, %v257_v32  ;;  %v1366_v42 = vor.u32 %v1365_v28, %v1361_v27  ;;  %v1357_v47 = vrot.slane %v1356_v35, 4  ;;  %v261_v54 = vrot.slane %v259_v43, 4 }
  0x27   : > { %v264_v55 = vrot.slane %v262_v45, 5  ;;  %v1374_v57 = vshrl.u32 %v3324_v38, 16  ;;  %v270_v59 = vrot.slane %v268_v48, 5  ;;  %v274_v60 = vrot.slane %v272_v49, 4  ;;  %v4186_v45 = vld [vmem:[%s5351_s1 + $0x18] sm:$0xff]  }
  0x28   : > { %3774 = vmatmul.mubr.msk.bf16.vlgmr.msra.gmra.mrb[0].mxu1 %vm463_vm3, %v3193_v41  ;;  %v1367_v53 = vrot.slane %v1366_v42, 4  ;;  %v1362_v58 = vsel %vm4369_vm4, %v1357_v47, %v1361_v27  ;;  %v280_v61 = vrot.slane %v278_v50, 5  ;;  %v1377_v3 = vshll.u32 %v3324_v38, 16  ;;  %v4490_v50 = vld [vmem:[%s4326_s30 + $0x34] sm:$0xf] }
  0x29   : > { %3790 = vmatpush3.bf16.msra.mxu1 %v4379_v40  ;;  %v265_v0 = vor.u32 %v264_v55, %v261_v54  ;;  %v1376_v1 = vrot.slane %v1374_v57, 4  ;;  %v4184_v40 = vld [vmem:[%s5351_s1 + $0x10] sm:$0xff]   ;;  %v275_v11 = vor.u32 %v274_v60, %v270_v59  ;;  %v1383_v13 = vshll.u32 %v4442_v52, 16  ;;  %v4493_v57 = vld [vmem:[%s4326_s30 + $0x38] sm:$0x1] }
  0x2a   : > { %v1372_v63 = vsel %vm4369_vm4, %v1367_v53, %v1371_v36  ;;  %3791 = vmatprep.subr.bf16.mxu1 %v4182_v46  ;;  %v1387_v14 = vshrl.u32 %v4442_v52, 16  ;;  %v1379_v17 = vrot.slane %v1377_v3, 5  ;;  %v1393_v18 = vshll.u32 %v4446_v56, 16  ;;  %v3327_v36 = vld [vmem:[%s4326_s30 + $0x30] sm:$0xf] }
  0x2b   : > { %v3352_v8 = vcombine.low %v1362_v58, %v1372_v63  ;;  %v266_v16 = vrot.slane %v265_v0, 4  ;;  %v283_v20 = vshrl.u32 %v4452_v62, 16  ;;  %v276_v21 = vrot.slane %v275_v11, 4  ;;  %v4499_v0 = vld [vmem:[%s4326_s30 + $0x30] sm:$0xf] }
  0x2c   : > { %v1385_v22 = vrot.slane %v1383_v13, 5  ;;  %v1389_v26 = vrot.slane %v1387_v14, 4  ;;  %v286_v27 = vshll.u32 %v4452_v62, 16  ;;  %v1380_v30 = vor.u32 %v1379_v17, %v1376_v1  ;;  %v4187_v11 = vld [vmem:[%s5351_s1 + $0xcc] sm:$0xff]   ;;  %v4509_v17 = vld [vmem:[%s4326_s30 + $0x34] sm:$0xf] }
  0x2d   : > { %3878 = vmatmul.mubr.msk.bf16.vlgmr.msra.gmra.mrb[0].mxu0 %vm463_vm3, %v3352_v8  ;;  %3792 = vmatpush3.bf16.msra.mxu1 %v4182_v46  ;;  %v271_v28 = vsel %vm4369_vm4, %v266_v16, %v270_v59  ;;  %v1395_v32 = vrot.slane %v1393_v18, 5  ;;  %v285_v35 = vrot.slane %v283_v20, 4  ;;  %v281_v38 = vsel %vm4369_vm4, %v276_v21, %v280_v61  ;;  %v4512_v18 = vld [vmem:[%s4326_s30 + $0x38] sm:$0x1] }
  0x2e   : > { %3894 = vmatpush3.bf16.msra.mxu0 %v4385_v44  ;;  %3793 = vmatprep.subr.bf16.mxu1 %v4184_v40  ;;  %v1390_v41 = vor.u32 %v1389_v26, %v1385_v22  ;;  %v288_v42 = vrot.slane %v286_v27, 5  ;;  %v292_v43 = vshll.u32 %v4460_v7, 16  ;;  %v4185_v44 = vld [vmem:[%s5351_s1 + $0xc4] sm:$0xff]   ;;  %v3194_v46 = vcombine.low %v271_v28, %v281_v38  ;;  %v3330_v27 = vld [vmem:[%s4326_s30 + $0x3c] sm:$0xf] }
  0x2f   : > { %3895 = vmatprep.subr.bf16.mxu0 %v4183_v5  ;;  %v1381_v47 = vrot.slane %v1380_v30, 4  ;;  %v296_v48 = vshrl.u32 %v4460_v7, 16  ;;  %v302_v49 = vshll.u32 %v4468_v15, 16  ;;  %v1398_v58 = vshrl.u32 %v3327_v36, 16 }
  0x30   : > { %v1391_v53 = vrot.slane %v1390_v41, 4  ;;  %v289_v54 = vor.u32 %v288_v42, %v285_v35  ;;  %v294_v55 = vrot.slane %v292_v43, 5  ;;  %3777 = vmatprep.mubr.msk.bf16.mxu1 %vm463_vm3, %v3194_v46  ;;  %v1401_v63 = vshll.u32 %v3327_v36, 16  ;;  %v4522_v36 = vld [vmem:[%s4326_s30 + $0x40] sm:$0xf] }
  0x31   : > { %3794 = vmatpush3.bf16.msra.mxu1 %v4184_v40  ;;  %v1386_v59 = vsel %vm4369_vm4, %v1381_v47, %v1385_v22  ;;  %v298_v60 = vrot.slane %v296_v48, 4  ;;  %v304_v61 = vrot.slane %v302_v49, 5  ;;  %v1400_v8 = vrot.slane %v1398_v58, 4 }
  0x32   : > { %3896 = vmatpush3.bf16.msra.mxu0 %v4183_v5  ;;  %v1396_v1 = vsel %vm4369_vm4, %v1391_v53, %v1395_v32  ;;  %v290_v3 = vrot.slane %v289_v54, 4  ;;  %v1407_v40 = vshll.u32 %v4490_v50, 16  ;;  %3795 = vmatprep.subr.bf16.mxu1 %v4186_v45  ;;  %v1403_v16 = vrot.slane %v1401_v63, 5 }
  0x33   : > { %3897 = vmatprep.subr.bf16.mxu0 %v4185_v44  ;;  %v3353_v13 = vcombine.low %v1386_v59, %v1396_v1  ;;  %v299_v14 = vor.u32 %v298_v60, %v294_v55  ;;  %v1411_v5 = vshrl.u32 %v4490_v50, 16  ;;  %v1417_v22 = vshll.u32 %v4493_v57, 16  ;;  %v4532_v60 = vld [vmem:[%s4326_s30 + $0x44] sm:$0x1] }
  0x34   : > { %v295_v20 = vsel %vm4369_vm4, %v290_v3, %v294_v55  ;;  %v1409_v21 = vrot.slane %v1407_v40, 5  ;;  %v307_v26 = vshrl.u32 %v4499_v0, 16  ;;  %v1404_v30 = vor.u32 %v1403_v16, %v1400_v8  ;;  %v4537_v40 = vld [vmem:[%s4326_s30 + $0x3c] sm:$0xf] }
  0x35   : > { %3796 = vmatpush3.bf16.msra.mxu1 %v4186_v45  ;;  %3881 = vmatprep.mubr.msk.bf16.mxu0 %vm463_vm3, %v3353_v13  ;;  %v300_v28 = vrot.slane %v299_v14, 4  ;;  %v1413_v32 = vrot.slane %v1411_v5, 4  ;;  %v310_v35 = vshll.u32 %v4499_v0, 16  ;;  %v1419_v38 = vrot.slane %v1417_v22, 5 }
  0x36   : > { %3898 = vmatpush3.bf16.msra.mxu0 %v4185_v44  ;;  %v309_v41 = vrot.slane %v307_v26, 4  ;;  %v316_v42 = vshll.u32 %v4509_v17, 16  ;;  %v320_v43 = vshrl.u32 %v4509_v17, 16  ;;  %v1405_v46 = vrot.slane %v1404_v30, 4 }
  0x37   : > { %3899 = vmatprep.subr.bf16.mxu0 %v4187_v11  ;;  %v305_v45 = vsel %vm4369_vm4, %v300_v28, %v304_v61  ;;  %v1414_v47 = vor.u32 %v1413_v32, %v1409_v21  ;;  %v312_v48 = vrot.slane %v310_v35, 5  ;;  %v326_v54 = vshll.u32 %v4512_v18, 16 }
  0x38   : > { %v3195_v44 = vcombine.low %v295_v20, %v305_v45  ;;  %v318_v49 = vrot.slane %v316_v42, 5  ;;  %v322_v53 = vrot.slane %v320_v43, 4  ;;  %v1410_v55 = vsel %vm4369_vm4, %v1405_v46, %v1409_v21  ;;  %v4543_v20 = vld [vmem:[%s4326_s30 + $0x40] sm:$0xf]  ;;  %v3333_v45 = vld [vmem:[%s4326_s30 + $0x48] sm:$0xf] }
  0x39   : > { %v1415_v58 = vrot.slane %v1414_v47, 4  ;;  %v313_v59 = vor.u32 %v312_v48, %v309_v41  ;;  %v1422_v63 = vshrl.u32 %v3330_v27, 16  ;;  %v328_v1 = vrot.slane %v326_v54, 5  ;;  %v4553_v41 = vld [vmem:[%s4326_s30 + $0x44] sm:$0x1] }
  0x3a   : > { %3900 = vmatpush3.bf16.msra.mxu0 %v4187_v11  ;;  %3778 = vmatmul.mubr.msk.bf16.gmra.mrb[4].mxu1 %vm463_vm3, %v3195_v44  ;;  %v323_v61 = vor.u32 %v322_v53, %v318_v49  ;;  %v1425_v3 = vshll.u32 %v3330_v27, 16  ;;  %v1431_v8 = vshll.u32 %v4522_v36, 16  ;;  %v1435_v5 = vshrl.u32 %v4522_v36, 16 }
  0x3b   : > { %v1420_v13 = vsel %vm4369_vm4, %v1415_v58, %v1419_v38  ;;  %v314_v14 = vrot.slane %v313_v59, 4  ;;  %v1424_v16 = vrot.slane %v1422_v63, 4  ;;  %v1441_v30 = vshll.u32 %v4532_v60, 16  ;;  %v4563_v59 = vld [vmem:[%s4326_s30 + $0x50] sm:$0x1] }
  0x3c   : > { %v3354_v11 = vcombine.low %v1410_v55, %v1420_v13  ;;  %v324_v21 = vrot.slane %v323_v61, 4  ;;  %v1427_v22 = vrot.slane %v1425_v3, 5  ;;  %v1433_v26 = vrot.slane %v1431_v8, 5  ;;  %v4566_v63 = vld [vmem:[%s4326_s30 + $0x48] sm:$0xf] }
  0x3d   : > { %v319_v27 = vsel %vm4369_vm4, %v314_v14, %v318_v49  ;;  %v1437_v28 = vrot.slane %v1435_v5, 4  ;;  %v331_v32 = vshrl.u32 %v4537_v40, 16  ;;  %v334_v42 = vshll.u32 %v4537_v40, 16  ;;  %v4559_v49 = vld [vmem:[%s4326_s30 + $0x4c] sm:$0xf] }
  0x3e   : > { %3882 = vmatmul.mubr.msk.bf16.gmra.mrb[4].mxu0 %vm463_vm3, %v3354_v11  ;;  %v329_v35 = vsel %vm4369_vm4, %v324_v21, %v328_v1  ;;  %v1428_v38 = vor.u32 %v1427_v22, %v1424_v16  ;;  %v340_v43 = vshll.u32 %v4543_v20, 16  ;;  %v1443_v48 = vrot.slane %v1441_v30, 5  ;;  %v4571_v13 = vld [vmem:[%s4326_s30 + $0x4c] sm:$0xf]  ;;  %v4579_v21 = vld [vmem:[%s5351_s1 + $0x20] ss:$0 sps:$4 sm:$0xff]  }
  0x3f   : > { %v3196_v46 = vcombine.low %v319_v27, %v329_v35  ;;  %v1438_v47 = vor.u32 %v1437_v28, %v1433_v26  ;;  %v333_v44 = vrot.slane %v331_v32, 4  ;;  %v336_v54 = vrot.slane %v334_v42, 5  ;;  %v4584_v42 = vld [vmem:[%s4326_s30 + $0x50] sm:$0x1]  ;;  %4136 = vmatprep.subr.msk.bf16.mxu1 %vm488_vm0, %v4579_v21 }
  0x40   : > { %v1429_v53 = vrot.slane %v1428_v38, 4  ;;  %v342_v55 = vrot.slane %v340_v43, 5  ;;  %v344_v58 = vshrl.u32 %v4543_v20, 16  ;;  %v350_v1 = vshll.u32 %v4553_v41, 16  ;;  %v4591_v43 = vld [vmem:[%s5351_s1 + $0xd4] ss:$0 sps:$4 sm:$0xff]  }
  0x41   : > { %3781 = vmatprep.mubr.msk.bf16.mxu1 %vm463_vm3, %v3196_v46  ;;  %v1439_v61 = vrot.slane %v1438_v47, 4  ;;  %v1446_v3 = vshrl.u32 %v3333_v45, 16  ;;  %v1449_v8 = vshll.u32 %v3333_v45, 16  ;;  %v337_v16 = vor.u32 %v336_v54, %v333_v44  ;;  %v3336_v44 = vld [vmem:[%s4326_s30 + $0x54] sm:$0xf]  ;;  %4140 = vmatprep.subr.msk.bf16.mxu0 %vm488_vm0, %v4591_v43 }
  0x42   : > { %v1434_v14 = vsel %vm4369_vm4, %v1429_v53, %v1433_v26  ;;  %v346_v5 = vrot.slane %v344_v58, 4  ;;  %v1455_v11 = vshll.u32 %v4559_v49, 16  ;;  %v352_v27 = vrot.slane %v350_v1, 5 }
  0x43   : > { %v1444_v22 = vsel %vm4369_vm4, %v1439_v61, %v1443_v48  ;;  %v1448_v28 = vrot.slane %v1446_v3, 4  ;;  %v1451_v30 = vrot.slane %v1449_v8, 5  ;;  %v338_v35 = vrot.slane %v337_v16, 4  ;;  %v4605_v16 = vld [vmem:[%s4326_s30 + $0x58] sm:$0xf] }
  0x44   : > { %v3355_v32 = vcombine.low %v1434_v14, %v1444_v22  ;;  %v347_v38 = vor.u32 %v346_v5, %v342_v55  ;;  %v1457_v26 = vrot.slane %v1455_v11, 5  ;;  %v1459_v46 = vshrl.u32 %v4559_v49, 16 }
  0x45   : > { %v1452_v45 = vor.u32 %v1451_v30, %v1448_v28  ;;  %v1465_v47 = vshll.u32 %v4563_v59, 16  ;;  %v355_v48 = vshrl.u32 %v4566_v63, 16  ;;  %v343_v53 = vsel %vm4369_vm4, %v338_v35, %v342_v55  ;;  %v4611_v28 = vld [vmem:[%s4326_s30 + $0x5c] sm:$0x1] }
  0x46   : > { %3885 = vmatprep.mubr.msk.bf16.mxu0 %vm463_vm3, %v3355_v32  ;;  %v348_v54 = vrot.slane %v347_v38, 4  ;;  %v358_v58 = vshll.u32 %v4566_v63, 16  ;;  %v364_v61 = vshll.u32 %v4571_v13, 16  ;;  %v1461_v3 = vrot.slane %v1459_v46, 4 }
  0x47   : > { %v1453_v1 = vrot.slane %v1452_v45, 4  ;;  %v1467_v8 = vrot.slane %v1465_v47, 5  ;;  %v357_v14 = vrot.slane %v355_v48, 4  ;;  %v368_v22 = vshrl.u32 %v4571_v13, 16 }
  0x48   : > { %v353_v5 = vsel %vm4369_vm4, %v348_v54, %v352_v27  ;;  %v360_v11 = vrot.slane %v358_v58, 5  ;;  %v366_v55 = vrot.slane %v364_v61, 5  ;;  %v1462_v35 = vor.u32 %v1461_v3, %v1457_v26  ;;  %v4623_v61 = vld [vmem:[%s4326_s30 + $0x58] sm:$0xf] }
  0x49   : > { %v3197_v30 = vcombine.low %v343_v53, %v353_v5  ;;  %v1458_v32 = vsel %vm4369_vm4, %v1453_v1, %v1457_v26  ;;  %v374_v38 = vshll.u32 %v4584_v42, 16  ;;  %v370_v46 = vrot.slane %v368_v22, 4 }
  0x4a   : > { %v361_v45 = vor.u32 %v360_v11, %v357_v14  ;;  %v1470_v47 = vshrl.u32 %v3336_v44, 16  ;;  %v1473_v48 = vshll.u32 %v3336_v44, 16  ;;  %v1463_v27 = vrot.slane %v1462_v35, 4 }
  0x4b   : > { %3782 = vmatmul.mubr.msk.bf16.gmra.mrb[8].mxu1 %vm463_vm3, %v3197_v30  ;;  %v376_v54 = vrot.slane %v374_v38, 5  ;;  %v1479_v58 = vshll.u32 %v4605_v16, 16  ;;  %v1483_v53 = vshrl.u32 %v4605_v16, 16  ;;  %v371_v1 = vor.u32 %v370_v46, %v366_v55  ;;  %v4629_v30 = vld [vmem:[%s4326_s30 + $0x5c] sm:$0x1] }
  0x4c   : > { %v362_v26 = vrot.slane %v361_v45, 4  ;;  %v1472_v3 = vrot.slane %v1470_v47, 4  ;;  %v1475_v14 = vrot.slane %v1473_v48, 5  ;;  %v1468_v44 = vsel %vm4369_vm4, %v1463_v27, %v1467_v8  ;;  %5358 = vst [vmem:[#allocation3_spill] sm:$0xff] %v4629_v30  ;;  %v3339_v47 = vld [vmem:[%s4326_s30 + $0x60] sm:$0xf] }
  0x4d   : > { %v1481_v5 = vrot.slane %v1479_v58, 5  ;;  %v1485_v11 = vrot.slane %v1483_v53, 4  ;;  %v1489_v22 = vshll.u32 %v4611_v28, 16  ;;  %v3356_v35 = vcombine.low %v1458_v32, %v1468_v44  ;;  %v4637_v27 = vld [vmem:[%s4326_s30 + $0x64] sm:$0xf] }
  0x4e   : > { %v367_v38 = vsel %vm4369_vm4, %v362_v26, %v366_v55  ;;  %v372_v45 = vrot.slane %v371_v1, 4  ;;  %v1476_v46 = vor.u32 %v1475_v14, %v1472_v3  ;;  %v379_v19 = vshrl.u32 %v4617_v31, 16 }
  0x4f   : > { %v1486_v48 = vor.u32 %v1485_v11, %v1481_v5  ;;  %v1491_v37 = vrot.slane %v1489_v22, 5  ;;  %v382_v8 = vshll.u32 %v4617_v31, 16  ;;  %3886 = vmatmul.mubr.msk.bf16.gmra.mrb[8].mxu0 %vm463_vm3, %v3356_v35  ;;  %v388_v55 = vshll.u32 %v4623_v61, 16 }
  0x50   : > { %v377_v32 = vsel %vm4369_vm4, %v372_v45, %v376_v54  ;;  %v1477_v58 = vrot.slane %v1476_v46, 4  ;;  %v392_v53 = vshrl.u32 %v4623_v61, 16  ;;  %v381_v3 = vrot.slane %v379_v19, 4  ;;  %v4653_v54 = vld [vmem:[%s5351_s1 + $0x48] sm:$0xff]  }
  0x51   : > { %v3198_v26 = vcombine.low %v367_v38, %v377_v32  ;;  %v1487_v1 = vrot.slane %v1486_v48, 4  ;;  %v384_v14 = vrot.slane %v382_v8, 5  ;;  %v390_v11 = vrot.slane %v388_v55, 5  ;;  %v4662_v48 = vld [vmem:[%s5351_s1 + $0xd8] sm:$0xff]  }
  0x52   : > { %v1482_v44 = vsel %vm4369_vm4, %v1477_v58, %v1481_v5  ;;  %v394_v22 = vrot.slane %v392_v53, 4  ;;  %v398_v35 = vshll.u32 %v4629_v30, 16  ;;  %v1494_v45 = vshrl.u32 %v3339_v47, 16  ;;  %v3372_v5 = vld [vmem:[%s4326_s30 + $0xc] sm:$0xe] }
  0x53   : > { %3785 = vmatprep.mubr.msk.bf16.mxu1 %vm463_vm3, %v3198_v26  ;;  %v1492_v19 = vsel %vm4369_vm4, %v1487_v1, %v1491_v37  ;;  %v385_v38 = vor.u32 %v384_v14, %v381_v3  ;;  %v1497_v46 = vshll.u32 %v3339_v47, 16  ;;  %v1503_v55 = vshll.u32 %v4637_v27, 16 }
  0x54   : > { %v3357_v8 = vcombine.low %v1482_v44, %v1492_v19  ;;  %v395_v32 = vor.u32 %v394_v22, %v390_v11  ;;  %v400_v58 = vrot.slane %v398_v35, 5  ;;  %v1496_v31 = vrot.slane %v1494_v45, 4 }
  0x55   : > { %v386_v53 = vrot.slane %v385_v38, 4  ;;  %v1499_v26 = vrot.slane %v1497_v46, 5  ;;  %v1507_v30 = vshrl.u32 %v4637_v27, 16  ;;  %v1505_v47 = vrot.slane %v1503_v55, 5 }
  0x56   : > { %3889 = vmatprep.mubr.msk.bf16.mxu0 %vm463_vm3, %v3357_v8  ;;  %v396_v37 = vrot.slane %v395_v32, 4  ;;  %v1513_v1 = vshll.u32 %v4648_v4, 16  ;;  %v681_v3 = vsel %vm488_vm0, %v4579_v21, 0  ;;  %v1892_v35 = vsel %vm488_vm0, %v4591_v43, 0  ;;  %v3373_v32 = vld [vmem:[%s4326_s30 + $0x18] sm:$0xe] }
  0x57   : > { %v391_v14 = vsel %vm4369_vm4, %v386_v53, %v390_v11  ;;  %v1500_v44 = vor.u32 %v1499_v26, %v1496_v31  ;;  %v1509_v22 = vrot.slane %v1507_v30, 4  ;;  %3798 = vmatpush3.bf16.msra.mxu1 %v681_v3  ;;  %3902 = vmatpush3.bf16.msra.mxu0 %v1892_v35  ;;  %v3380_v11 = vrot.slane %v3372_v5, 9  ;;  %v3374_v26 = vld [vmem:[%s4326_s30 + $0x24] sm:$0xe] }
  0x58   : > { %v401_v21 = vsel %vm4369_vm4, %v396_v37, %v400_v58  ;;  %v1515_v38 = vrot.slane %v1513_v1, 5  ;;  %v5361_v31 = vrot.slane %v4354_v23, 5  ;;  %3815 = vmatprep.subr.bf16.mxu1 %v4653_v54  ;;  %v3214_v8 = vcombine.low %v4364_v33, %v4374_v39  ;;  %3919 = vmatprep.subr.bf16.mxu0 %v4662_v48 }
  0x59   : > { %v3199_v45 = vcombine.low %v391_v14, %v401_v21  ;;  %v1501_v43 = vrot.slane %v1500_v44, 4  ;;  %v1510_v46 = vor.u32 %v1509_v22, %v1505_v47  ;;  %v5363_v5 = vrot.slane %v4357_v24, 5 }
  0x5a   : > { %v1754_v30 = vrot.slane %v5361_v31, 4  ;;  %v5362_v55 = vmov %v5361_v31  ;;  %v812_v37 = vrot.slane %v4344_v12, 5  ;;  %v5364_v3 = vrot.slane %v4405_v2, 5  ;;  %v3375_v31 = vld [vmem:[%s4326_s30 + $0x30] sm:$0xe]  ;;  %v4211_v12 = vld [vmem:[%s5351_s1 + $0xfc] sm:$0xff]  }
  0x5b   : > { %v1753_v58 = vsel %vm4676_vm7, %v3380_v11, %v5362_v55  ;;  %3786 = vmatmul.mubr.msk.bf16.gmra.mrb[12].mxu1 %vm463_vm3, %v3199_v45  ;;  %v1506_v33 = vsel %vm4369_vm4, %v1501_v43, %v1505_v47  ;;  %v1511_v1 = vrot.slane %v1510_v46, 4  ;;  %v1762_v24 = vrot.slane %v4412_v6, 5  ;;  %v3376_v43 = vld [vmem:[%s4326_s30 + $0x3c] sm:$0xe]  ;;  %v3377_v55 = vld [vmem:[%s4326_s30 + $0x48] sm:$0xe] }
  0x5c   : > { %v1756_v53 = vsel %vm4676_vm7, %v1754_v30, %v5363_v5  ;;  %v1761_v14 = vrot.slane %v5364_v3, 4  ;;  %v5365_v44 = vcombine.low %v4335_v9, %v4338_v10  ;;  %v3381_v22 = vrot.slane %v3373_v32, 9  ;;  %v4195_v32 = vld [vmem:[%s5351_s1 + $0x50] sm:$0xff]  }
  0x5d   : > { %v3397_v23 = vcombine.low %v1753_v58, %v1756_v53  ;;  %v1766_v35 = vrot.slane %v4442_v52, 5  ;;  %v1516_v21 = vsel %vm4369_vm4, %v1511_v1, %v1515_v38  ;;  %v3382_v47 = vrot.slane %v3374_v26, 9  ;;  %v3378_v5 = vld [vmem:[%s4326_s30 + $0x54] sm:$0xe] }
  0x5e   : > { %3799 = vmatprep.mubr.msk.bf16.mxu1 %vm463_vm3, %v5365_v44  ;;  %v1769_v11 = vrot.slane %v4446_v56, 5  ;;  %v816_v30 = vrot.slane %v4374_v39, 5  ;;  %v3358_v6 = vcombine.low %v1506_v33, %v1516_v21  ;;  %v819_v9 = vrot.slane %v4391_v51, 5 }
  0x5f   : > { %v1768_v45 = vrot.slane %v1766_v35, 4  ;;  %v1773_v10 = vrot.slane %v4490_v50, 5  ;;  %v5366_v52 = vmov %v5364_v3  ;;  %v1763_v56 = vsel %vm4676_vm7, %v1761_v14, %v1762_v24 }
  0x60   : > { %3890 = vmatmul.mubr.msk.bf16.gmra.mrb[12].mxu0 %vm463_vm3, %v3358_v6  ;;  %v1760_v38 = vsel %vm4676_vm7, %v3381_v22, %v5366_v52  ;;  %v3215_v46 = vcombine.low %v4420_v25, %v4425_v29  ;;  %v1780_v50 = vrot.slane %v4522_v36, 5  ;;  %v1767_v2 = vsel %vm4676_vm7, %v3382_v47, %v1766_v35 }
  0x61   : > { %3903 = vmatprep.mubr.msk.bf16.mxu0 %vm463_vm3, %v3397_v23  ;;  %v1770_v58 = vsel %vm4676_vm7, %v1768_v45, %v1769_v11  ;;  %v3383_v53 = vrot.slane %v3375_v31, 9  ;;  %v1776_v25 = vrot.slane %v4493_v57, 5  ;;  %v3384_v29 = vrot.slane %v3376_v43, 9  ;;  %v4743_v23 = vld [vmem:[%s4326_s30 + $0x60] sm:$0xe] }
  0x62   : > { %v1787_v26 = vrot.slane %v4559_v49, 5  ;;  %v3398_v36 = vcombine.low %v1760_v38, %v1763_v56  ;;  %v1775_v33 = vrot.slane %v1773_v10, 4  ;;  %v1783_v1 = vrot.slane %v4532_v60, 5  ;;  %v4196_v57 = vld [vmem:[%s5351_s1 + $0xe0] sm:$0xff]   ;;  %v4198_v49 = vld [vmem:[%s5351_s1 + $0x58] sm:$0xff]  }
  0x63   : > { %3800 = vmatmul.mubr.msk.bf16.vlgmr.msra.gmra.mrb[0].mxu1 %vm463_vm3, %v3214_v8  ;;  %v3399_v3 = vcombine.low %v1767_v2, %v1770_v58  ;;  %v1782_v8 = vrot.slane %v1780_v50, 4  ;;  %v3385_v14 = vrot.slane %v3377_v55, 9  ;;  %v1794_v24 = vrot.slane %v4605_v16, 5  ;;  %v781_v60 = vld [vmem:[%s4326_s30 + $0xc] sm:$0xe]  ;;  %v4202_v43 = vld [vmem:[%s5351_s1 + $0x60] sm:$0xff]  }
  0x64   : > { %3816 = vmatpush3.bf16.msra.mxu1 %v4653_v54  ;;  %3803 = vmatprep.mubr.msk.bf16.mxu1 %vm463_vm3, %v3215_v46  ;;  %v1789_v44 = vrot.slane %v1787_v26, 4  ;;  %v1790_v54 = vrot.slane %v4563_v59, 5  ;;  %v3386_v22 = vrot.slane %v3378_v5, 9  ;;  %v1801_v35 = vrot.slane %v4637_v27, 5  ;;  %v780_v45 = vld [vmem:[%s4326_s30] sm:$0xe] }
  0x65   : > { %3817 = vmatprep.subr.bf16.mxu1 %v4195_v32  ;;  %v3216_v21 = vcombine.low %v4452_v62, %v4460_v7  ;;  %v3217_v47 = vcombine.low %v4499_v0, %v4509_v17  ;;  %v1796_v11 = vrot.slane %v1794_v24, 4  ;;  %v1797_v31 = vrot.slane %v4611_v28, 5  ;;  %v4775_v0 = vld [vmem:[%s5351_s1 + $0x68] ss:$0 sps:$4 sm:$0xff]   ;;  %v783_v46 = vld [vmem:[%s4326_s30 + $0x24] sm:$0xe] }
  0x66   : > { %v1774_v16 = vsel %vm4676_vm7, %v3383_v53, %v1773_v10  ;;  %v1777_v6 = vsel %vm4676_vm7, %v1775_v33, %v1776_v25  ;;  %v4768_v59 = vsel %vm4676_vm7, %v3384_v29, %v1780_v50  ;;  %v3218_v62 = vcombine.low %v4537_v40, %v4543_v20  ;;  %v4199_v28 = vld [vmem:[%s5351_s1 + $0xe8] sm:$0xff]   ;;  %v4239_v53 = vld [vmem:[%s4326_s30 + $0x4] sm:$0xf]  ;;  %v784_v29 = vld [vmem:[%s4326_s30 + $0x30] sm:$0xe] }
  0x67   : > { %v1784_v10 = vsel %vm4676_vm7, %v1782_v8, %v1783_v1  ;;  %v3387_v52 = vrot.slane %v4743_v23, 9  ;;  %v4790_v38 = vrot.slane %v1801_v35, 4  ;;  %v1804_v56 = vrot.slane %v4648_v4, 5  ;;  %v4208_v4 = vld [vmem:[%s4326_s30 + $0x18] sm:$0xff]  }
  0x68   : > { %3904 = vmatmul.mubr.msk.bf16.vlgmr.msra.gmra.mrb[0].mxu0 %vm463_vm3, %v3398_v36  ;;  %3818 = vmatpush3.bf16.msra.mxu1 %v4195_v32  ;;  %v4798_v32 = vsel %vm4676_vm7, %v3385_v14, %v1787_v26  ;;  %v4802_v50 = vsel %vm4676_vm7, %v1789_v44, %v1790_v54  ;;  %v3235_v55 = vrot.slane %v781_v60, 9  ;;  %v818_v2 = vrot.slane %v816_v30, 4  ;;  %v4203_v60 = vld [vmem:[%s5351_s1 + $0xf0] sm:$0xff]  }
  0x69   : > { %3920 = vmatpush3.bf16.msra.mxu0 %v4662_v48  ;;  %3907 = vmatprep.mubr.msk.bf16.mxu0 %vm463_vm3, %v3399_v3  ;;  %v4808_v48 = vsel %vm4676_vm7, %v3386_v22, %v1794_v24  ;;  %v4812_v58 = vsel %vm4676_vm7, %v1796_v11, %v1797_v31  ;;  %v3234_v5 = vrot.slane %v780_v45, 9  ;;  %v809_v25 = vrot.slane %v4239_v53, 5  ;;  %v785_v3 = vld [vmem:[%s4326_s30 + $0x3c] sm:$0xe]  ;;  %v786_v24 = vld [vmem:[%s4326_s30 + $0x48] sm:$0xe] }
  0x6a   : > { %3921 = vmatprep.subr.bf16.mxu0 %v4196_v57  ;;  %3819 = vmatprep.subr.bf16.mxu1 %v4198_v49  ;;  %v3400_v26 = vcombine.low %v1774_v16, %v1777_v6  ;;  %v3219_v36 = vcombine.low %v4566_v63, %v4571_v13  ;;  %v4823_v33 = vsel %vm4676_vm7, %v3235_v55, %v816_v30  ;;  %v3237_v63 = vrot.slane %v783_v46, 9 }
  0x6b   : > { %3804 = vmatmul.mubr.msk.bf16.gmra.mrb[4].mxu1 %vm463_vm3, %v3216_v21  ;;  %v4829_v1 = vsel %vm4676_vm7, %v818_v2, %v819_v9  ;;  %v3401_v8 = vcombine.low %v4768_v59, %v1784_v10  ;;  %v830_v14 = vrot.slane %v4460_v7, 5  ;;  %v3402_v51 = vcombine.low %v4798_v32, %v4802_v50  ;;  %v787_v59 = vld [vmem:[%s4326_s30 + $0x54] sm:$0xe] }
  0x6c   : > { %3820 = vmatpush3.bf16.msra.mxu1 %v4198_v49  ;;  %3807 = vmatprep.mubr.msk.bf16.mxu1 %vm463_vm3, %v3217_v47  ;;  %v3252_v39 = vcombine.low %v4823_v33, %v4829_v1  ;;  %v3403_v30 = vcombine.low %v4808_v48, %v4812_v58  ;;  %v949_v9 = vsel %vm488_vm0, %v4775_v0, 0  ;;  %v833_v49 = vrot.slane %v4468_v15, 5  ;;  %v4860_v15 = vld [vmem:[%s5351_s1 + $0x6c] sm:$0xff]   ;;  %v4212_v58 = vld [vmem:[%s5351_s1 + $0x74] sm:$0xff]   ;;  %v4216_v33 = vld [vmem:[%s5351_s1 + $0x7c] sm:$0xff]  }
  0x6d   : > { %3922 = vmatpush3.bf16.msra.mxu0 %v4196_v57  ;;  %3821 = vmatprep.subr.bf16.mxu1 %v4202_v43  ;;  %v4850_v7 = vsel %vm4676_vm7, %v3237_v63, %v830_v14  ;;  %v832_v57 = vrot.slane %v830_v14, 4  ;;  %v3238_v44 = vrot.slane %v784_v29, 9  ;;  %v837_v54 = vrot.slane %v4509_v17, 5  ;;  %v782_v14 = vld [vmem:[%s4326_s30 + $0x18] sm:$0xe] }
  0x6e   : > { %3923 = vmatprep.subr.bf16.mxu0 %v4199_v28  ;;  %v4855_v22 = vsel %vm4676_vm7, %v3234_v5, %v809_v25  ;;  %v840_v21 = vrot.slane %v4512_v18, 5  ;;  %v3239_v47 = vrot.slane %v785_v3, 9  ;;  %v844_v11 = vrot.slane %v4543_v20, 5 }
  0x6f   : > { %v811_v31 = vrot.slane %v809_v25, 4  ;;  %v4867_v17 = vsel %vm4676_vm7, %v832_v57, %v833_v49  ;;  %v4871_v16 = vsel %vm4676_vm7, %v3238_v44, %v837_v54  ;;  %v839_v6 = vrot.slane %v837_v54, 4  ;;  %v4210_v54 = vld [vmem:[%s4326_s30 + $0x24] sm:$0xff]  }
  0x70   : > { %3908 = vmatmul.mubr.msk.bf16.gmra.mrb[4].mxu0 %vm463_vm3, %v3400_v26  ;;  %3822 = vmatpush3.bf16.msra.mxu1 %v4202_v43  ;;  %v3254_v18 = vcombine.low %v4850_v7, %v4867_v17  ;;  %v4879_v45 = vsel %vm4676_vm7, %v3239_v47, %v844_v11  ;;  %v846_v10 = vrot.slane %v844_v11, 4  ;;  %v847_v43 = vrot.slane %v4553_v41, 5  ;;  %v4240_v26 = vld [vmem:[%s4326_s30 + $0x1c] sm:$0xf]  ;;  %v3467_v11 = vld [vmem:[%s4326_s30 + $0x24] sm:$0xf] }
  0x71   : > { %3924 = vmatpush3.bf16.msra.mxu0 %v4199_v28  ;;  %3911 = vmatprep.mubr.msk.bf16.mxu0 %vm463_vm3, %v3401_v8  ;;  %v4207_v28 = vld [vmem:[%s5351_s1 + $0xf8] ss:$0 sps:$4 sm:$0xff]   ;;  %v4889_v46 = vsel %vm4676_vm7, %v839_v6, %v840_v21  ;;  %v3240_v55 = vrot.slane %v786_v24, 9  ;;  %v851_v2 = vrot.slane %v4571_v13, 5  ;;  %v854_v5 = vrot.slane %v4584_v42, 5  ;;  %v5367_v42 = vld [vmem:[#allocation3_spill] sm:$0xff] }
  0x72   : > { %3925 = vmatprep.subr.bf16.mxu0 %v4203_v60  ;;  %4137 = vmatprep.subr.msk.bf16.mxu1 %vm488_vm0, %v4775_v0  ;;  %v3255_v41 = vcombine.low %v4871_v16, %v4889_v46  ;;  %v4901_v0 = vsel %vm4676_vm7, %v846_v10, %v847_v43  ;;  %v3241_v53 = vrot.slane %v787_v59, 9  ;;  %v858_v25 = vrot.slane %v4623_v61, 5  ;;  %v4214_v21 = vld [vmem:[%s5351_s1 + $0x104] sm:$0xff]   ;;  %v4217_v6 = vld [vmem:[%s5351_s1 + $0x10c] sm:$0xff]   ;;  %v4215_v10 = vld [vmem:[%s4326_s30 + $0x3c] sm:$0xff]  }
  0x73   : > { %3808 = vmatmul.mubr.msk.bf16.gmra.mrb[8].mxu1 %vm463_vm3, %v3218_v62  ;;  %v3256_v13 = vcombine.low %v4879_v45, %v4901_v0  ;;  %v4909_v40 = vsel %vm4676_vm7, %v3240_v55, %v851_v2  ;;  %v853_v20 = vrot.slane %v851_v2, 4  ;;  %v861_v62 = vrot.slane %v5367_v42, 5  ;;  %v4220_v59 = vld [vmem:[%s5351_s1 + $0x84] sm:$0xff]   ;;  %v5009_v43 = vld [vmem:[%s4326_s30 + $0x20] sm:$0x1] }
  0x74   : > { %3811 = vmatprep.mubr.msk.bf16.mxu1 %vm463_vm3, %v3219_v36  ;;  %3824 = vmatpush3.bf16.msra.mxu1 %v949_v9  ;;  %v813_v29 = vsel %vm4676_vm7, %v811_v31, %v812_v37  ;;  %v823_v36 = vrot.slane %v4240_v26, 5  ;;  %v4920_v3 = vsel %vm4676_vm7, %v3241_v53, %v858_v25  ;;  %v860_v8 = vrot.slane %v858_v25, 4  ;;  %v5368_v9 = vld [vmem:[#allocation2_spill] sm:$0xff]  ;;  %v4998_v31 = vld [vmem:[%s4326_s30 + $0x28] sm:$0xf] }
  0x75   : > { %3926 = vmatpush3.bf16.msra.mxu0 %v4203_v60  ;;  %3841 = vmatprep.subr.bf16.mxu1 %v4860_v15  ;;  %v2129_v63 = vsel %vm488_vm0, %v4207_v28, 0  ;;  %v4930_v37 = vsel %vm4676_vm7, %v853_v20, %v854_v5  ;;  %v3220_v49 = vcombine.low %v5368_v9, %v4623_v61  ;;  %v1802_v61 = vsel %vm4676_vm7, %v3387_v52, %v1801_v35  ;;  %v4241_v52 = vld [vmem:[%s4326_s30 + $0x20] sm:$0x1]  ;;  %v4218_v53 = vld [vmem:[%s4326_s30 + $0x48] sm:$0xff]   ;;  %v4225_v17 = vld [vmem:[%s5351_s1 + $0x11c] ss:$0 sps:$4 sm:$0xff]  }
  0x76   : > { %4141 = vmatprep.subr.msk.bf16.mxu0 %vm488_vm0, %v4207_v28  ;;  %v3257_v24 = vcombine.low %v4909_v40, %v4930_v37  ;;  %v4938_v60 = vsel %vm4676_vm7, %v860_v8, %v861_v62  ;;  %v3251_v57 = vcombine.low %v4855_v22, %v813_v29  ;;  %v1805_v27 = vsel %vm4676_vm7, %v4790_v38, %v1804_v56  ;;  %v4213_v22 = vld [vmem:[%s4326_s30 + $0x30] sm:$0xff]   ;;  %v4224_v7 = vld [vmem:[%s5351_s1 + $0x8c] ss:$0 sps:$4 sm:$0xff]   ;;  %v4222_v45 = vld [vmem:[%s4326_s30 + $0x60] sm:$0xff]  }
  0x77   : > { %v3258_v44 = vcombine.low %v4920_v3, %v4938_v60  ;;  %v3236_v23 = vrot.slane %v782_v14, 9  ;;  %v825_v35 = vrot.slane %v823_v36, 4  ;;  %v826_v32 = vrot.slane %v4241_v52, 5  ;;  %v4221_v29 = vld [vmem:[%s5351_s1 + $0x114] sm:$0xff]  }
  0x78   : > { %3912 = vmatmul.mubr.msk.bf16.gmra.mrb[8].mxu0 %vm463_vm3, %v3402_v51  ;;  %v3404_v50 = vcombine.low %v1802_v61, %v1805_v27  ;;  %v3464_v51 = vld [vmem:[%s4326_s30 + $0x18] sm:$0xf]  ;;  %v2293_v25 = vshrl.u32 %v3467_v11, 16  ;;  %v2296_v20 = vshll.u32 %v3467_v11, 16  ;;  %v2302_v42 = vshll.u32 %v4998_v31, 16  ;;  %v5051_v27 = vld [vmem:[%s5351_s1 + $0x120] sm:$0xff]  }
  0x79   : > { %3915 = vmatprep.mubr.msk.bf16.mxu0 %vm463_vm3, %v3403_v30  ;;  %3928 = vmatpush3.bf16.msra.mxu0 %v2129_v63  ;;  %v824_v48 = vsel %vm4676_vm7, %v3236_v23, %v823_v36  ;;  %v827_v38 = vsel %vm4676_vm7, %v825_v35, %v826_v32  ;;  %v4981_v30 = vld [vmem:[%s4326_s30 + $0x1c] sm:$0xf]  ;;  %v2269_v1 = vshrl.u32 %v3464_v51, 16  ;;  %v2306_v62 = vshrl.u32 %v4998_v31, 16  ;;  %v5040_v36 = vld [vmem:[%s4326_s30 + $0x2c] sm:$0x1] }
  0x7a   : > { %3945 = vmatprep.subr.bf16.mxu0 %v4211_v12  ;;  %v3253_v56 = vcombine.low %v824_v48, %v827_v38  ;;  %v2278_v47 = vshll.u32 %v4981_v30, 16  ;;  %v2288_v46 = vshll.u32 %v5009_v43, 16  ;;  %v2295_v8 = vrot.slane %v2293_v25, 4  ;;  %v3473_v48 = vld [vmem:[%s4326_s30 + $0x3c] sm:$0xf] }
  0x7b   : > { %3812 = vmatmul.mubr.msk.bf16.gmra.mrb[12].mxu1 %vm463_vm3, %v3220_v49  ;;  %v2271_v28 = vrot.slane %v2269_v1, 4  ;;  %v2298_v63 = vrot.slane %v2296_v20, 5  ;;  %v2308_v14 = vrot.slane %v2306_v62, 4  ;;  %v1186_v61 = vsel %vm488_vm0, %v4224_v7, 0  ;;  %v5063_v38 = vld [vmem:[%s4326_s30 + $0x40] sm:$0xf] }
  0x7c   : > { %3825 = vmatprep.mubr.msk.bf16.mxu1 %vm463_vm3, %v3251_v57  ;;  %v5011_v2 = vrot.slane %v2278_v47, 5  ;;  %v2546_v57 = vsel %vm488_vm0, %v4225_v17, 0  ;;  %v2341_v40 = vshrl.u32 %v3473_v48, 16  ;;  %v2344_v37 = vshll.u32 %v3473_v48, 16  ;;  %v5137_v48 = vld [vmem:[%s4326_s30 + $0x64] sm:$0xf] }
  0x7d   : > { %v2350_v1 = vshll.u32 %v5063_v38, 16 }
  0x7e   : > { %v2343_v62 = vrot.slane %v2341_v40, 4 }
  0x80   : > { %3916 = vmatmul.mubr.msk.bf16.gmra.mrb[12].mxu0 %vm463_vm3, %v3404_v50  ;;  %v2290_v50 = vrot.slane %v2288_v46, 5 }
  0x81   : > { %3929 = vmatprep.mubr.msk.bf16.mxu0 %vm463_vm3, %v4208_v4  ;;  %v2312_v4 = vshll.u32 %v5040_v36, 16 }
  0x83   : > { %3826 = vmatmul.mubr.msk.bf16.vlgmr.msra.gmra.mrb[0].mxu1 %vm463_vm3, %v3252_v39  ;;  %v2272_v39 = vshll.u32 %v3464_v51, 16  ;;  %v2299_v51 = vor.u32 %v2298_v63, %v2295_v8  ;;  %v3479_v63 = vld [vmem:[%s4326_s30 + $0x54] sm:$0xf] }
  0x84   : > { %3842 = vmatpush3.bf16.msra.mxu1 %v4860_v15  ;;  %3829 = vmatprep.mubr.msk.bf16.mxu1 %vm463_vm3, %v3253_v56  ;;  %v2282_v15 = vshrl.u32 %v4981_v30, 16  ;;  %v3476_v56 = vld [vmem:[%s4326_s30 + $0x48] sm:$0xf] }
  0x85   : > { %3843 = vmatprep.subr.bf16.mxu1 %v4212_v58  ;;  %v2274_v55 = vrot.slane %v2272_v39, 5  ;;  %v2354_v39 = vshrl.u32 %v5063_v38, 16  ;;  %v2365_v47 = vshrl.u32 %v3476_v56, 16 }
  0x86   : > { %v2284_v5 = vrot.slane %v2282_v15, 4  ;;  %v2368_v15 = vshll.u32 %v3476_v56, 16  ;;  %v4227_v56 = vld [vmem:[%s4326_s30 + $0x18] sm:$0xff]  }
  0x87   : > { %v2275_v26 = vor.u32 %v2274_v55, %v2271_v28  ;;  %v4226_v28 = vld [vmem:[%s4326_s30 + $0xc] sm:$0xff]  }
  0x88   : > { %3930 = vmatmul.mubr.msk.bf16.vlgmr.msra.gmra.mrb[0].mxu0 %vm463_vm3, %v4210_v54  ;;  %3844 = vmatpush3.bf16.msra.mxu1 %v4212_v58  ;;  %v2285_v16 = vor.u32 %v2284_v5, %v5011_v2  ;;  %v4219_v58 = vld [vmem:[%s4326_s30 + $0x54] sm:$0xff]   ;;  %v5096_v5 = vrot.slane %v2299_v51, 4  ;;  %v2392_v51 = vshll.u32 %v3479_v63, 16 }
  0x89   : > { %3946 = vmatpush3.bf16.msra.mxu0 %v4211_v12  ;;  %3933 = vmatprep.mubr.msk.bf16.mxu0 %vm463_vm3, %v4213_v22  ;;  %v5042_v12 = vrot.slane %v2302_v42, 5  ;;  %v2276_v52 = vrot.slane %v2275_v26, 4  ;;  %v5104_v42 = vld [vmem:[%s4326_s30 + $0x44] sm:$0x1]  ;;  %v2370_v26 = vrot.slane %v2368_v15, 5  ;;  %v2422_v15 = vshll.u32 %v5137_v48, 16 }
  0x8a   : > { %3947 = vmatprep.subr.bf16.mxu0 %v4214_v21  ;;  %3845 = vmatprep.subr.bf16.mxu1 %v4216_v33  ;;  %v2286_v32 = vrot.slane %v2285_v16, 4  ;;  %v5114_v16 = vld [vmem:[%s4326_s30 + $0x50] sm:$0x1] }
  0x8b   : > { %3830 = vmatmul.mubr.msk.bf16.gmra.mrb[4].mxu1 %vm463_vm3, %v3254_v18  ;;  %v3470_v18 = vld [vmem:[%s4326_s30 + $0x30] sm:$0xf]  ;;  %v2309_v54 = vor.u32 %v2308_v14, %v5042_v12  ;;  %v2281_v11 = vsel %vm4369_vm4, %v2276_v52, %v5011_v2  ;;  %v2305_v3 = vsel %vm4369_vm4, %v5096_v5, %v5042_v12  ;;  %v3482_v52 = vld [vmem:[%s4326_s30 + $0x60] sm:$0xf]  ;;  %v2384_v12 = vshll.u32 %v5114_v16, 16 }
  0x8c   : > { %3846 = vmatpush3.bf16.msra.mxu1 %v4216_v33  ;;  %3833 = vmatprep.mubr.msk.bf16.mxu1 %vm463_vm3, %v3255_v41  ;;  %v5037_v41 = vld [vmem:[%s4326_s30 + $0x34] sm:$0xf]  ;;  %v2317_v9 = vshrl.u32 %v3470_v18, 16  ;;  %v2320_v49 = vshll.u32 %v3470_v18, 16  ;;  %v5073_v33 = vld [vmem:[%s4326_s30 + $0x4c] sm:$0xf]  ;;  %v2291_v55 = vsel %vm4369_vm4, %v2286_v32, %v2290_v50 }
  0x8d   : > { %3948 = vmatpush3.bf16.msra.mxu0 %v4214_v21  ;;  %3847 = vmatprep.subr.bf16.mxu1 %v4220_v59  ;;  %v2326_v23 = vshll.u32 %v5037_v41, 16  ;;  %v2330_v35 = vshrl.u32 %v5037_v41, 16  ;;  %v2356_v18 = vrot.slane %v2354_v39, 4  ;;  %v4223_v14 = vld [vmem:[%s4326_s30 + $0x6c] sm:$0xff]   ;;  %v2413_v40 = vshrl.u32 %v3482_v52, 16 }
  0x8e   : > { %3949 = vmatprep.subr.bf16.mxu0 %v4217_v6  ;;  %v2319_v22 = vrot.slane %v2317_v9, 4  ;;  %v2322_v21 = vrot.slane %v2320_v49, 5  ;;  %v3497_v9 = vcombine.low %v2281_v11, %v2291_v55  ;;  %v5127_v49 = vld [vmem:[%s4326_s30 + $0x58] sm:$0xf]  ;;  %v5154_v39 = vld [vmem:[%s5351_s1 + $0x128] sm:$0xff]   ;;  %v2426_v11 = vshrl.u32 %v5137_v48, 16 }
  0x8f   : > { %v5077_v0 = vrot.slane %v2326_v23, 5  ;;  %v5160_v55 = vld [vmem:[%s4326_s30 + $0x5c] sm:$0x1]  ;;  %v2394_v5 = vrot.slane %v2392_v51, 5 }
  0x90   : > { %3934 = vmatmul.mubr.msk.bf16.gmra.mrb[4].mxu0 %vm463_vm3, %v4215_v10  ;;  %3848 = vmatpush3.bf16.msra.mxu1 %v4220_v59  ;;  %v2374_v59 = vshll.u32 %v5073_v33, 16  ;;  %v2378_v10 = vshrl.u32 %v5073_v33, 16  ;;  %v2323_v25 = vor.u32 %v2322_v21, %v2319_v22  ;;  %v2402_v22 = vshrl.u32 %v5127_v49, 16  ;;  %v4229_v21 = vld [vmem:[%s4326_s30 + $0x24] sm:$0xff]  }
  0x91   : > { %3950 = vmatpush3.bf16.msra.mxu0 %v4217_v6  ;;  %3937 = vmatprep.mubr.msk.bf16.mxu0 %vm463_vm3, %v4218_v53  ;;  %v5088_v6 = vrot.slane %v2312_v4, 5  ;;  %v5098_v53 = vrot.slane %v2309_v54, 4  ;;  %v2389_v4 = vshrl.u32 %v3479_v63, 16  ;;  %v2398_v54 = vshll.u32 %v5127_v49, 16 }
  0x92   : > { %3951 = vmatprep.subr.bf16.mxu0 %v4221_v29  ;;  %4138 = vmatprep.subr.msk.bf16.mxu1 %vm488_vm0, %v4224_v7  ;;  %v2346_v7 = vrot.slane %v2344_v37, 5  ;;  %v5116_v46 = vrot.slane %v2374_v59, 5  ;;  %v2380_v8 = vrot.slane %v2378_v10, 4  ;;  %v2324_v60 = vrot.slane %v2323_v25, 4 }
  0x93   : > { %3834 = vmatmul.mubr.msk.bf16.gmra.mrb[8].mxu1 %vm463_vm3, %v3256_v13  ;;  %v2332_v13 = vrot.slane %v2330_v35, 4  ;;  %v2416_v37 = vshll.u32 %v3482_v52, 16  ;;  %v2386_v59 = vrot.slane %v2384_v12, 5  ;;  %v2391_v10 = vrot.slane %v2389_v4, 4 }
  0x94   : > { %3837 = vmatprep.mubr.msk.bf16.mxu1 %vm463_vm3, %v3257_v24  ;;  %3850 = vmatpush3.bf16.msra.mxu1 %v1186_v61  ;;  %v5081_v24 = vld [vmem:[%s4326_s30 + $0x38] sm:$0x1]  ;;  %v2315_v61 = vsel %vm4369_vm4, %v5098_v53, %v5088_v6  ;;  %v2347_v35 = vor.u32 %v2346_v7, %v2343_v62  ;;  %v5162_v53 = vrot.slane %v2398_v54, 5  ;;  %v2404_v25 = vrot.slane %v2402_v22, 4 }
  0x95   : > { %3952 = vmatpush3.bf16.msra.mxu0 %v4221_v29  ;;  %3997 = vmatprep.subr.bf16.mxu1 %v5051_v27  ;;  %v2333_v2 = vor.u32 %v2332_v13, %v5077_v0  ;;  %v2336_v20 = vshll.u32 %v5081_v24, 16  ;;  %v2367_v29 = vrot.slane %v2365_v47, 4  ;;  %v2418_v62 = vrot.slane %v2416_v37, 5 }
  0x96   : > { %4142 = vmatprep.subr.msk.bf16.mxu0 %vm488_vm0, %v4225_v17  ;;  %v5107_v17 = vrot.slane %v2350_v1, 5  ;;  %v2348_v47 = vrot.slane %v2347_v35, 4  ;;  %v4233_v35 = vld [vmem:[%s4326_s30 + $0x3c] sm:$0xff]  }
  0x97   : > { %v2338_v23 = vrot.slane %v2336_v20, 5  ;;  %v2371_v50 = vor.u32 %v2370_v26, %v2367_v29  ;;  %v2415_v20 = vrot.slane %v2413_v40, 4  ;;  %v5170_v29 = vrot.slane %v2422_v15, 5 }
  0x98   : > { %3938 = vmatmul.mubr.msk.bf16.gmra.mrb[8].mxu0 %vm463_vm3, %v4219_v58  ;;  %v2357_v32 = vor.u32 %v2356_v18, %v5107_v17  ;;  %v2381_v58 = vor.u32 %v2380_v8, %v5116_v46  ;;  %v5168_v18 = vld [vmem:[%s4326_s30 + $0x68] sm:$0x1]  ;;  %v2428_v26 = vrot.slane %v2426_v11, 4  ;;  %v3485_v8 = vld [vmem:[%s4326_s30 + $0x6c] sm:$0xf]  ;;  %v2353_v63 = vsel %vm4369_vm4, %v2348_v47, %v5107_v17 }
  0x99   : > { %3941 = vmatprep.mubr.msk.bf16.mxu0 %vm463_vm3, %v4222_v45  ;;  %3954 = vmatpush3.bf16.msra.mxu0 %v2546_v57  ;;  %v2334_v57 = vrot.slane %v2333_v2, 4  ;;  %v2329_v45 = vsel %vm4369_vm4, %v2324_v60, %v5077_v0  ;;  %v2372_v6 = vrot.slane %v2371_v50, 4  ;;  %v3498_v2 = vcombine.low %v2305_v3, %v2315_v61  ;;  %v5183_v60 = vld [vmem:[%s4326_s30 + $0x70] sm:$0xf]  ;;  %v4238_v47 = vld [vmem:[%s5351_s1 + $0x140] ss:$0 sps:$4 sm:$0xff]  }
  0x9a   : > { %3971 = vmatprep.subr.bf16.mxu0 %v5051_v27  ;;  %v2358_v0 = vrot.slane %v2357_v32, 4  ;;  %v2408_v3 = vshll.u32 %v5160_v55, 16  ;;  %v2395_v17 = vor.u32 %v2394_v5, %v2391_v10  ;;  %v2419_v52 = vor.u32 %v2418_v62, %v2415_v20  ;;  %v4234_v10 = vld [vmem:[%s4326_s30 + $0x48] sm:$0xff]  }
  0x9b   : > { %3838 = vmatmul.mubr.msk.bf16.gmra.mrb[12].mxu1 %vm463_vm3, %v3258_v44  ;;  %v2360_v44 = vshll.u32 %v5104_v42, 16  ;;  %v2339_v1 = vsel %vm4369_vm4, %v2334_v57, %v2338_v23  ;;  %v2377_v61 = vsel %vm4369_vm4, %v2372_v6, %v5116_v46  ;;  %v2405_v23 = vor.u32 %v2404_v25, %v5162_v53  ;;  %v4235_v46 = vld [vmem:[%s5351_s1 + $0x138] sm:$0xff]   ;;  %v3522_v6 = vld [vmem:[%s4326_s30 + $0x48] sm:$0xe] }
  0x9c   : > { %3851 = vmatprep.mubr.msk.bf16.mxu1 %vm463_vm3, %v4226_v28  ;;  %v2382_v28 = vrot.slane %v2381_v58, 4  ;;  %v3499_v7 = vcombine.low %v2329_v45, %v2339_v1  ;;  %v2432_v32 = vshll.u32 %v5168_v18, 16  ;;  %v2437_v50 = vshrl.u32 %v3485_v8, 16  ;;  %v5207_v45 = vld [vmem:[%s4326_s30 + $0x74] sm:$0x1] }
  0x9d   : > { %v2362_v13 = vrot.slane %v2360_v44, 5  ;;  %v4231_v44 = vld [vmem:[%s4326_s30 + $0x30] sm:$0xff]   ;;  %v2440_v12 = vshll.u32 %v3485_v8, 16  ;;  %v2429_v4 = vor.u32 %v2428_v26, %v5170_v29  ;;  %v2450_v58 = vshrl.u32 %v5183_v60, 16 }
  0x9e   : > { %v2387_v57 = vsel %vm4369_vm4, %v2382_v28, %v2386_v59  ;;  %v2406_v22 = vrot.slane %v2405_v23, 4  ;;  %v2434_v40 = vrot.slane %v2432_v32, 5  ;;  %v2439_v37 = vrot.slane %v2437_v50, 4 }
  0x9f   : > { %v3501_v54 = vcombine.low %v2377_v61, %v2387_v57  ;;  %v2442_v1 = vrot.slane %v2440_v12, 5  ;;  %v2430_v15 = vrot.slane %v2429_v4, 4  ;;  %v2723_v59 = vrot.slane %v5073_v33, 5  ;;  %v4237_v12 = vld [vmem:[%s4326_s30 + $0x60] sm:$0xff]  }
  0xa0   : > { %3942 = vmatmul.mubr.msk.bf16.gmra.mrb[12].mxu0 %vm463_vm3, %v4223_v14  ;;  %v2363_v14 = vsel %vm4369_vm4, %v2358_v0, %v2362_v13  ;;  %v2420_v13 = vrot.slane %v2419_v52, 4  ;;  %v2452_v0 = vrot.slane %v2450_v58, 4  ;;  %v2695_v25 = vrot.slane %v4981_v30, 5  ;;  %v3524_v52 = vld [vmem:[%s4326_s30 + $0x60] sm:$0xe] }
  0xa1   : > { %3955 = vmatprep.mubr.msk.bf16.mxu0 %vm463_vm3, %v3497_v9  ;;  %v4232_v9 = vld [vmem:[%s5351_s1 + $0x130] sm:$0xff]   ;;  %v3500_v51 = vcombine.low %v2353_v63, %v2363_v14  ;;  %v2443_v20 = vor.u32 %v2442_v1, %v2439_v37  ;;  %v2835_v62 = vsel %vm488_vm0, %v4238_v47, 0  ;;  %v2435_v26 = vsel %vm4369_vm4, %v2430_v15, %v2434_v40  ;;  %v3519_v58 = vld [vmem:[%s4326_s30 + $0x24] sm:$0xe] }
  0xa2   : > { %v2425_v33 = vsel %vm4369_vm4, %v2420_v13, %v5170_v29  ;;  %v2725_v8 = vrot.slane %v2723_v59, 4  ;;  %v2726_v63 = vrot.slane %v5114_v16, 5  ;;  %v2730_v29 = vrot.slane %v5127_v49, 5  ;;  %v3520_v1 = vld [vmem:[%s4326_s30 + $0x30] sm:$0xe] }
  0xa3   : > { %3852 = vmatmul.mubr.msk.bf16.vlgmr.msra.gmra.mrb[0].mxu1 %vm463_vm3, %v4227_v56  ;;  %v2446_v56 = vshll.u32 %v5183_v60, 16  ;;  %v3503_v61 = vcombine.low %v2425_v33, %v2435_v26  ;;  %v2444_v57 = vrot.slane %v2443_v20, 4  ;;  %v2733_v50 = vrot.slane %v5160_v55, 5 }
  0xa4   : > { %4002 = vmatpush3.bf16.msra.mxu1 %v5051_v27  ;;  %3855 = vmatprep.mubr.msk.bf16.mxu1 %vm463_vm3, %v4229_v21  ;;  %v2410_v21 = vrot.slane %v2408_v3, 5  ;;  %v2698_v3 = vrot.slane %v5009_v43, 5  ;;  %v2727_v49 = vsel %vm4676_vm7, %v2725_v8, %v2726_v63  ;;  %v2737_v43 = vrot.slane %v5137_v48, 5 }
  0xa5   : > { %3998 = vmatprep.subr.bf16.mxu1 %v5154_v39  ;;  %v5214_v11 = vrot.slane %v2446_v56, 5  ;;  %v2732_v32 = vrot.slane %v2730_v29, 4  ;;  %v2709_v13 = vrot.slane %v5037_v41, 5  ;;  %v3527_v37 = vrot.slane %v3519_v58, 9 }
  0xa6   : > { %v2411_v5 = vsel %vm4369_vm4, %v2406_v22, %v2410_v21  ;;  %v2739_v22 = vrot.slane %v2737_v43, 4  ;;  %v2740_v21 = vrot.slane %v5168_v18, 5  ;;  %v2744_v15 = vrot.slane %v5183_v60, 5 }
  0xa7   : > { %v2453_v30 = vor.u32 %v2452_v0, %v5214_v11  ;;  %v2449_v48 = vsel %vm4369_vm4, %v2444_v57, %v5214_v11  ;;  %v2705_v18 = vrot.slane %v5040_v36, 5  ;;  %v2747_v36 = vrot.slane %v5207_v45, 5 }
  0xa8   : > { %3956 = vmatmul.mubr.msk.bf16.vlgmr.msra.gmra.mrb[0].mxu0 %vm463_vm3, %v3498_v2  ;;  %4003 = vmatpush3.bf16.msra.mxu1 %v5154_v39  ;;  %v4236_v2 = vld [vmem:[%s4326_s30 + $0x54] sm:$0xff]   ;;  %v2741_v0 = vsel %vm4676_vm7, %v2739_v22, %v2740_v21  ;;  %v2716_v20 = vrot.slane %v5063_v38, 5  ;;  %v2719_v63 = vrot.slane %v5104_v42, 5 }
  0xa9   : > { %3972 = vmatpush3.bf16.msra.mxu0 %v5051_v27  ;;  %3959 = vmatprep.mubr.msk.bf16.mxu0 %vm463_vm3, %v3499_v7  ;;  %v2396_v27 = vrot.slane %v2395_v17, 4  ;;  %v3518_v7 = vld [vmem:[%s4326_s30 + $0x18] sm:$0xe]  ;;  %v2454_v17 = vrot.slane %v2453_v30, 4 }
  0xaa   : > { %3973 = vmatprep.subr.bf16.mxu0 %v5154_v39  ;;  %3999 = vmatprep.subr.bf16.mxu1 %v4232_v9  ;;  %v3526_v14 = vrot.slane %v3518_v7, 9  ;;  %v3521_v7 = vld [vmem:[%s4326_s30 + $0x3c] sm:$0xe]  ;;  %v2718_v8 = vrot.slane %v2716_v20, 4 }
  0xab   : > { %3856 = vmatmul.mubr.msk.bf16.gmra.mrb[4].mxu1 %vm463_vm3, %v4231_v44  ;;  %v2401_v28 = vsel %vm4369_vm4, %v2396_v27, %v5162_v53  ;;  %v3530_v53 = vrot.slane %v3522_v6, 9  ;;  %v3532_v27 = vrot.slane %v3524_v52, 9  ;;  %v3525_v6 = vld [vmem:[%s4326_s30 + $0x6c] sm:$0xe]  ;;  %v3529_v38 = vrot.slane %v3521_v7, 9 }
  0xac   : > { %4004 = vmatpush3.bf16.msra.mxu1 %v4232_v9  ;;  %3859 = vmatprep.mubr.msk.bf16.mxu1 %vm463_vm3, %v4233_v35  ;;  %v3502_v44 = vcombine.low %v2401_v28, %v2411_v5  ;;  %v3523_v35 = vld [vmem:[%s4326_s30 + $0x54] sm:$0xe]  ;;  %v2712_v28 = vrot.slane %v5081_v24, 5  ;;  %v3533_v60 = vrot.slane %v3525_v6, 9  ;;  %s3582_s30 = sshll.u32 %s5374_s9, 6 }
  0xad   : > { %3974 = vmatpush3.bf16.msra.mxu0 %v5154_v39  ;;  %4000 = vmatprep.subr.bf16.mxu1 %v4235_v46  ;;  %v2456_v39 = vshll.u32 %v5207_v45, 16  ;;  %v2724_v23 = vsel %vm4676_vm7, %v3530_v53, %v2723_v59  ;;  %v2738_v41 = vsel %vm4676_vm7, %v3532_v27, %v2737_v43  ;;  %v3528_v59 = vrot.slane %v3520_v1, 9  ;;  %s5325_s16 = scalar_lea.vmem %s5352_s2, %s3582_s30 }
  0xae   : > { %3975 = vmatprep.subr.bf16.mxu0 %v4232_v9  ;;  %v3547_v56 = vcombine.low %v2724_v23, %v2727_v49  ;;  %v2745_v53 = vsel %vm4676_vm7, %v3533_v60, %v2744_v15 }
  0xaf   : > { %v2458_v16 = vrot.slane %v2456_v39, 5  ;;  %v3549_v39 = vcombine.low %v2738_v41, %v2741_v0  ;;  %v2710_v24 = vsel %vm4676_vm7, %v3528_v59, %v2709_v13 }
  0xb0   : > { %3960 = vmatmul.mubr.msk.bf16.gmra.mrb[4].mxu0 %vm463_vm3, %v3500_v51  ;;  %4005 = vmatpush3.bf16.msra.mxu1 %v4235_v46  ;;  %v2702_v51 = vrot.slane %v4998_v31, 5 }
  0xb1   : > { %3976 = vmatpush3.bf16.msra.mxu0 %v4232_v9  ;;  %3963 = vmatprep.mubr.msk.bf16.mxu0 %vm463_vm3, %v3501_v54  ;;  %v2697_v9 = vrot.slane %v2695_v25, 4  ;;  %v3531_v54 = vrot.slane %v3523_v35, 9  ;;  %v2459_v55 = vsel %vm4369_vm4, %v2454_v17, %v2458_v16 }
  0xb2   : > { %3977 = vmatprep.subr.bf16.mxu0 %v4235_v46  ;;  %4144 = vmatprep.subr.msk.bf16.mxu1 %vm488_vm0, %v4238_v47  ;;  %v3504_v31 = vcombine.low %v2449_v48, %v2459_v55  ;;  %v2704_v11 = vrot.slane %v2702_v51, 4 }
  0xb3   : > { %3860 = vmatmul.mubr.msk.bf16.gmra.mrb[8].mxu1 %vm463_vm3, %v4234_v10  ;;  %v2699_v4 = vsel %vm4676_vm7, %v2697_v9, %v2698_v3  ;;  %v2731_v34 = vsel %vm4676_vm7, %v3531_v54, %v2730_v29  ;;  %v2711_v10 = vrot.slane %v2709_v13, 4  ;;  %v2720_v9 = vsel %vm4676_vm7, %v2718_v8, %v2719_v63 }
  0xb4   : > { %3863 = vmatprep.mubr.msk.bf16.mxu1 %vm463_vm3, %v4236_v2  ;;  %4006 = vmatpush3.bf16.msra.mxu1 %v2835_v62  ;;  %v2703_v2 = vsel %vm4676_vm7, %v3527_v37, %v2702_v51  ;;  %v2706_v33 = vsel %vm4676_vm7, %v2704_v11, %v2705_v18 }
  0xb5   : > { %3978 = vmatpush3.bf16.msra.mxu0 %v4235_v46  ;;  %v2696_v46 = vsel %vm4676_vm7, %v3526_v14, %v2695_v25  ;;  %v2746_v25 = vrot.slane %v2744_v15, 4  ;;  %v3544_v45 = vcombine.low %v2703_v2, %v2706_v33  ;;  %v2717_v14 = vsel %vm4676_vm7, %v3529_v38, %v2716_v20 }
  0xb6   : > { %4143 = vmatprep.subr.msk.bf16.mxu0 %vm488_vm0, %v4238_v47  ;;  %v3543_v40 = vcombine.low %v2696_v46, %v2699_v4  ;;  %v2734_v47 = vsel %vm4676_vm7, %v2732_v32, %v2733_v50  ;;  %v3546_v3 = vcombine.low %v2717_v14, %v2720_v9 }
  0xb7   : > { %v3548_v5 = vcombine.low %v2731_v34, %v2734_v47  ;;  %v2748_v26 = vsel %vm4676_vm7, %v2746_v25, %v2747_v36 }
  0xb8   : > { %3964 = vmatmul.mubr.msk.bf16.gmra.mrb[8].mxu0 %vm463_vm3, %v3502_v44  ;;  %v3550_v29 = vcombine.low %v2745_v53, %v2748_v26 }
  0xb9   : > { %3967 = vmatprep.mubr.msk.bf16.mxu0 %vm463_vm3, %v3503_v61  ;;  %3980 = vmatpush3.bf16.msra.mxu0 %v2835_v62  ;;  %v2713_v62 = vsel %vm4676_vm7, %v2711_v10, %v2712_v28 }
  0xba   : > { %v3545_v30 = vcombine.low %v2710_v24, %v2713_v62 }
  0xbb   : > { %3864 = vmatmul.mubr.msk.bf16.gmra.mrb[12].mxu1 %vm463_vm3, %v4237_v12 }
  0xbc   : > { %3989 = vmatprep.mubr.msk.bf16.mxu1 %vm463_vm3, %v3547_v56 }
  0xc0   : > { %3968 = vmatmul.mubr.msk.bf16.gmra.mrb[12].mxu0 %vm463_vm3, %v3504_v31 }
  0xc1   : > { %3981 = vmatprep.mubr.msk.bf16.mxu0 %vm463_vm3, %v3543_v40 }
  0xc3   : > { %3990 = vmatmul.mubr.msk.bf16.vlgmr.msra.gmra.mrb[16].mxu1 %vm463_vm3, %v3548_v5 }
  0xc4   : > { %3993 = vmatprep.mubr.msk.bf16.mxu1 %vm463_vm3, %v3549_v39 }
  0xc8   : > { %3982 = vmatmul.mubr.msk.bf16.vlgmr.msra.gmra.mrb[0].mxu0 %vm463_vm3, %v3544_v45 }
  0xc9   : > { %3985 = vmatprep.mubr.msk.bf16.mxu0 %vm463_vm3, %v3545_v30 }
  0xcb   : > { %3994 = vmatmul.mubr.msk.bf16.gmra.mrb[20].mxu1 %vm463_vm3, %v3550_v29 }
  0xd0   : > { %3986 = vmatmul.mubr.msk.bf16.gmra.mrb[4].mxu0 %vm463_vm3, %v3546_v3 }
 0x176   : > { %v3853_v44 = vpop.f32.mrb[0].mxu1 }
 0x177   : > { %v1222_v61 = vpop.f32.mrb[1].mxu1 }
 0x178   : > { %v3854_v57 = vpop.f32.mrb[2].mxu1 }
 0x179   : > { %v5311_v42 = vpop.f32.mrb[3].mxu1 }
 0x17e   : > { %v5313_v16 = vpop.f32.mrb[4].mxu1 }
 0x17f   : > { %v5315_v17 = vpop.f32.mrb[5].mxu1 }
 0x180   : > { %v5317_v23 = vpop.f32.mrb[6].mxu1 }
 0x181   : > { %v5319_v49 = vpop.f32.mrb[7].mxu1 }
 0x186   : > { %v3861_v19 = vpop.f32.mrb[8].mxu1 }
 0x187   : > { %v1254_v35 = vpop.f32.mrb[9].mxu1 }
 0x188   : > { %v3862_v43 = vpop.f32.mrb[10].mxu1 }
 0x189   : > { %v1257_v52 = vpop.f32.mrb[11].mxu1 }
 0x18b   : > { %v3965_v32 = vpop.f32.mrb[8].mxu0 }
 0x18c   : > { %v4015_v50 = vadd.f32 %v3965_v32, %v3861_v19  ;;  %v2614_v12 = vpop.f32.mrb[9].mxu0 }
 0x18d   : > { %v4017_v46 = vadd.f32 %v2614_v12, %v1254_v35  ;;  %v3966_v4 = vpop.f32.mrb[10].mxu0 }
 0x18e   : > { %v4019_v48 = vadd.f32 %v3966_v4, %v3862_v43  ;;  %v2617_v56 = vpop.f32.mrb[11].mxu0  ;;  %v3865_v58 = vpop.f32.mrb[12].mxu1 }
 0x18f   : > { %v4021_v51 = vadd.f32 %v2617_v56, %v1257_v52  ;;  %v1270_v54 = vpop.f32.mrb[13].mxu1 }
 0x190   : > { %v3866_v55 = vpop.f32.mrb[14].mxu1 }
 0x191   : > { %v1273_v27 = vpop.f32.mrb[15].mxu1 }
 0x193   : > { %v3969_v22 = vpop.f32.mrb[12].mxu0 }
 0x194   : > { %v4023_v21 = vadd.f32 %v3969_v22, %v3865_v58  ;;  %v2630_v13 = vpop.f32.mrb[13].mxu0 }
 0x195   : > { %v4025_v40 = vadd.f32 %v2630_v13, %v1270_v54  ;;  %v3970_v37 = vpop.f32.mrb[14].mxu0 }
 0x196   : > { %v4027_v1 = vadd.f32 %v3970_v37, %v3866_v55  ;;  %v2633_v31 = vpop.f32.mrb[15].mxu0  ;;  %v3991_v34 = vpop.f32.mrb[16].mxu1 }
 0x197   : > { %v4029_v47 = vadd.f32 %v2633_v31, %v1273_v27  ;;  %v4016_v15 = vadd.f32 %v4015_v50, %v3991_v34  ;;  %v2903_v11 = vpop.f32.mrb[17].mxu1 }
 0x198   : > { %v4018_v18 = vadd.f32 %v4017_v46, %v2903_v11  ;;  %v3992_v41 = vpop.f32.mrb[18].mxu1 }
 0x199   : > { %v2976_v0 = vmul.f32 0.01, %v4016_v15  ;;  %v4020_v6 = vadd.f32 %v4019_v48, %v3992_v41  ;;  %v2906_v59 = vpop.f32.mrb[19].mxu1  ;;  %vm2960_vm8 = vcmp.ge.f32.partialorder %v4016_v15, 0.0 }
 0x19a   : > { %vm2958_vm9 = vcmp.ge.f32.partialorder %v4018_v18, 0.0  ;;  %v2974_v10 = vmul.f32 0.01, %v4018_v18  ;;  %v4022_v28 = vadd.f32 %v4021_v51, %v2906_v59 }
 0x19b   : > { %v3983_v5 = vpop.f32.mrb[0].mxu0  ;;  %vm2961_vm10 = vcmp.ge.f32.partialorder %v4020_v6, 0.0  ;;  %v2977_v39 = vmul.f32 0.01, %v4020_v6  ;;  %v2992_v2 = vsel %vm2960_vm8, %v4016_v15, %v2976_v0 }
 0x19c   : > { %v4007_v60 = vadd.f32 %v3983_v5, %v3853_v44  ;;  %v2871_v25 = vpop.f32.mrb[1].mxu0  ;;  %vm2959_vm11 = vcmp.ge.f32.partialorder %v4022_v28, 0.0  ;;  %v2975_v36 = vmul.f32 0.01, %v4022_v28  ;;  %v2990_v20 = vsel %vm2958_vm9, %v4018_v18, %v2974_v10 }
 0x19d   : > { %v4008_v33 = vadd.f32 %v2871_v25, %v1222_v61  ;;  %v3984_v24 = vpop.f32.mrb[2].mxu0  ;;  %v2993_v62 = vsel %vm2961_vm10, %v4020_v6, %v2977_v39 }
 0x19e   : > { %vm2952_vm12 = vcmp.ge.f32.partialorder %v4007_v60, 0.0  ;;  %v2968_v7 = vmul.f32 0.01, %v4007_v60  ;;  %v4009_v45 = vadd.f32 %v3984_v24, %v3854_v57  ;;  %v3627_v53 = vpack.c.bf16 %v2993_v62, %v2992_v2  ;;  %v2874_v26 = vpop.f32.mrb[3].mxu0  ;;  %v3995_v30 = vpop.f32.mrb[20].mxu1 }
 0x19f   : > { %vm2950_vm13 = vcmp.ge.f32.partialorder %v4008_v33, 0.0  ;;  %v2966_v38 = vmul.f32 0.01, %v4008_v33  ;;  %v4010_v8 = vadd.f32 %v2874_v26, %v5311_v42  ;;  %v2991_v63 = vsel %vm2959_vm11, %v4022_v28, %v2975_v36  ;;  %v2919_v29 = vpop.f32.mrb[21].mxu1 }
 0x1a0   : > { %v2984_v14 = vsel %vm2952_vm12, %v4007_v60, %v2968_v7  ;;  %vm2953_vm14 = vcmp.ge.f32.partialorder %v4009_v45, 0.0  ;;  %v2969_v9 = vmul.f32 0.01, %v4009_v45  ;;  %3643 = vst [vmem:[%s5325_s16 + $0x28] sm:$0xff] %v3627_v53   ;;  %v3622_v3 = vpack.c.bf16 %v2991_v63, %v2990_v20  ;;  %v3996_v44 = vpop.f32.mrb[22].mxu1 }
 0x1a1   : > { %v2982_v61 = vsel %vm2950_vm13, %v4008_v33, %v2966_v38  ;;  %vm2951_vm15 = vcmp.ge.f32.partialorder %v4010_v8, 0.0  ;;  %v2967_v57 = vmul.f32 0.01, %v4010_v8  ;;  %v4024_v19 = vadd.f32 %v4023_v21, %v3995_v30  ;;  %v2922_v35 = vpop.f32.mrb[23].mxu1 }
 0x1a2   : > { %v2985_v43 = vsel %vm2953_vm14, %v4009_v45, %v2969_v9  ;;  %3642 = vst [vmem:[%s5325_s16 + $0x20] sm:$0xff] %v3622_v3   ;;  %v4026_v52 = vadd.f32 %v4025_v40, %v2919_v29  ;;  %v4028_v42 = vadd.f32 %v4027_v1, %v3996_v44  ;;  %v4030_v32 = vadd.f32 %v4029_v47, %v2922_v35 }
 0x1a3   : > { %v3607_v50 = vpack.c.bf16 %v2985_v43, %v2984_v14  ;;  %v2983_v12 = vsel %vm2951_vm15, %v4010_v8, %v2967_v57  ;;  %v3987_v46 = vpop.f32.mrb[4].mxu0  ;;  %vm2964_vm0 = vcmp.ge.f32.partialorder %v4024_v19, 0.0  ;;  %v2980_v4 = vmul.f32 0.01, %v4024_v19 }
 0x1a4   : > { %v3602_v48 = vpack.c.bf16 %v2983_v12, %v2982_v61  ;;  %v4011_v56 = vadd.f32 %v3987_v46, %v5313_v16  ;;  %v2887_v58 = vpop.f32.mrb[5].mxu0  ;;  %vm2965_vm1 = vcmp.ge.f32.partialorder %v4028_v42, 0.0  ;;  %v2981_v55 = vmul.f32 0.01, %v4028_v42 }
 0x1a5   : > { %3639 = vst [vmem:[%s5325_s16 + $0x8] sm:$0xff] %v3607_v50   ;;  %v4012_v51 = vadd.f32 %v2887_v58, %v5315_v17  ;;  %v3988_v54 = vpop.f32.mrb[6].mxu0  ;;  %v2996_v22 = vsel %vm2964_vm0, %v4024_v19, %v2980_v4  ;;  %v2978_v21 = vmul.f32 0.01, %v4026_v52  ;;  %vm2962_vm5 = vcmp.ge.f32.partialorder %v4026_v52, 0.0 }
 0x1a6   : > { %3603 = vst [vmem:[%s5325_s16] sm:$0xff] %v3602_v48   ;;  %v2972_v27 = vmul.f32 0.01, %v4011_v56  ;;  %v4013_v13 = vadd.f32 %v3988_v54, %v5317_v23  ;;  %v2890_v40 = vpop.f32.mrb[7].mxu0  ;;  %vm2956_vm2 = vcmp.ge.f32.partialorder %v4011_v56, 0.0  ;;  %v2997_v1 = vsel %vm2965_vm1, %v4028_v42, %v2981_v55 }
 0x1a7   : > { %v2970_v37 = vmul.f32 0.01, %v4012_v51  ;;  %v4014_v16 = vadd.f32 %v2890_v40, %v5319_v49  ;;  %vm2954_vm3 = vcmp.ge.f32.partialorder %v4012_v51, 0.0  ;;  %v3637_v17 = vpack.c.bf16 %v2997_v1, %v2996_v22 }
 0x1a8   : > { %vm2957_vm4 = vcmp.ge.f32.partialorder %v4013_v13, 0.0  ;;  %v2973_v31 = vmul.f32 0.01, %v4013_v13  ;;  %vm2963_vm7 = vcmp.ge.f32.partialorder %v4030_v32, 0.0  ;;  %v2988_v47 = vsel %vm2956_vm2, %v4011_v56, %v2972_v27 }
 0x1a9   : > { %vm2955_vm6 = vcmp.ge.f32.partialorder %v4014_v16, 0.0  ;;  %v2971_v34 = vmul.f32 0.01, %v4014_v16  ;;  %3645 = vst [vmem:[%s5325_s16 + $0x38] sm:$0xff] %v3637_v17   ;;  %v2979_v15 = vmul.f32 0.01, %v4030_v32  ;;  %v2986_v11 = vsel %vm2954_vm3, %v4012_v51, %v2970_v37 }
 0x1aa   : > { %v2989_v23 = vsel %vm2957_vm4, %v4013_v13, %v2973_v31  ;;  %v2994_v0 = vsel %vm2962_vm5, %v4026_v52, %v2978_v21 }
 0x1ab   : > { %v3617_v18 = vpack.c.bf16 %v2989_v23, %v2988_v47  ;;  %v2987_v41 = vsel %vm2955_vm6, %v4014_v16, %v2971_v34  ;;  %v2995_v6 = vsel %vm2963_vm7, %v4030_v32, %v2979_v15 }
 0x1ac   : > { %v3612_v49 = vpack.c.bf16 %v2987_v41, %v2986_v11  ;;  %v3632_v59 = vpack.c.bf16 %v2995_v6, %v2994_v0 }
 0x1ad   : > { %3641 = vst [vmem:[%s5325_s16 + $0x18] sm:$0xff] %v3617_v18  }
 0x1ae   : > { %3640 = vst [vmem:[%s5325_s16 + $0x10] sm:$0xff] %v3612_v49   ;;  %3644 = vst [vmem:[%s5325_s16 + $0x30] sm:$0xff] %v3632_v59  }
 0x1af PF: > { %s12_s11 = sadd.s32 1, %s4264_s11   ;;  %s5369_s9 = smov %s4260_s10 }
 0x1b0   : > { %p9_p5 = scmp.ge.s32.totalorder %s12_s11, 4   ;;  %s5370_s10 = smov %s5372_s12 }
 0x1b2   :  { %11 = sbr.rel (!%p9_p5) target bundleno = 2 (0x2), region = 69 }

</bundles_post_ra>
